<compile_context>
chip_gen: v5e
topology: v5e:2x2
jax: 0.10.0
libtpu: 0.0.40
codegen_flags: <defaults>
</compile_context>

<pallas_src>
import functools

import jax
import jax.numpy as jnp
from jax import lax
from jax.experimental import pallas as pl
from jax.experimental.pallas import tpu as pltpu


def _round_up(v, m):
    return (v + m - 1) // m * m


# -----------------------------------------------------------------------------
# Kernel: one Cout tile per grid step.  The whole batch for that channel tile is
# processed inside the step (BatchNorm statistics couple batch + space, so Cout
# tiles are the only independent partition).
# -----------------------------------------------------------------------------
def crb_kernel(scal_ref,    # SMEM (2,)                [delta, weight_y]
               xcol_ref,    # VMEM (K, NPo_pad) bf16   im2col of x, batch stacked on lanes
               w_ref,       # VMEM (tc, K)      f32    conv weight (weight_x folded in)
               mt_ref,      # VMEM (Po, Pu_pad) bf16   bilinear interp matrix, transposed
               prm_ref,     # VMEM (tc, 128)    f32    lane0=bias, lane1=gamma, lane2=beta
               y_ref,       # VMEM (N, tc, Pu_pad) f32
               ypre_ref,    # VMEM (N, tc, Pu_pad) f32
               ynext_ref,   # VMEM (N, tc, Pu_pad) f32 out
               yleft_ref,   # VMEM (N, tc, Pu_pad) f32 out
               g_ref,       # VMEM (N*tc, Po)   f32    scratch: regrouped conv output
               *, n_batch, po, inv_count, pad_fix, eps):
    delta = scal_ref[0]
    w_y = scal_ref[1]
    tc = w_ref.shape[0]

    prm = prm_ref[...]
    bias = prm[:, 0:1]                                    # (tc, 1)
    gamma = prm[:, 1:2]
    beta = prm[:, 2:3]

    # -- conv as ONE batch-stacked MXU matmul: (tc, K) @ (K, N*Po), f32 accumulate.
    g = jnp.dot(w_ref[...].astype(jnp.bfloat16), xcol_ref[...],
                preferred_element_type=jnp.float32)
    g = jnp.maximum(g + bias, 0.0)                        # bias + ReLU in f32

    # -- regroup lane-stacked images into rows so the upsample is a single big-M
    #    matmul.  Static slices; lanes >= N*Po (pad garbage) are never read.
    for b in range(n_batch):
        g_ref[b * tc:(b + 1) * tc, :] = g[:, b * po:(b + 1) * po]

    # -- bilinear upsample as ONE matmul: (N*tc, Po) @ (Po, Pu_pad).
    up = jnp.dot(g_ref[...].astype(jnp.bfloat16), mt_ref[...],
                 preferred_element_type=jnp.float32)
    up = up.reshape(n_batch, tc, up.shape[-1])            # free relayout (tc % 8 == 0)

    # -- z = weight_y * y + up.  Padded Pu lanes are exactly zero (interp matrix pad
    #    columns and the y/y_pre pads are zero), so they add nothing to the BN sums.
    y = y_ref[...]
    z = w_y * y + up

    # -- BatchNorm2d (training mode, biased variance).  Two-pass: mean, then the
    #    centered second moment, with an exact correction for the zero-padded lanes
    #    (each contributes mean^2 to sum((z - mean)^2)).
    mean = jnp.sum(jnp.sum(z, axis=2, keepdims=True), axis=0,
                   keepdims=True) * inv_count             # (1, tc, 1)
    zc = z - mean
    s2 = jnp.sum(jnp.sum(zc * zc, axis=2, keepdims=True), axis=0, keepdims=True)
    var = s2 * inv_count - pad_fix * mean * mean
    scale = gamma[None] * lax.rsqrt(var + eps)            # (1, tc, 1)
    bn = zc * scale + beta[None]

    # -- nmODE update.
    y_left = (delta * w_y) * y + delta * bn
    yleft_ref[...] = y_left
    ynext_ref[...] = y - 1.5 * y_left + 0.5 * ypre_ref[...]


# -----------------------------------------------------------------------------
# Wrapper helpers.
# -----------------------------------------------------------------------------
def _im2col_batched(x, kh, kw):
    # x: (N, Cin, H, W), stride 1, no padding -> (N, Cin*kh*kw, Ho*Wo)
    n, cin, h, w = x.shape
    ho, wo = h - kh + 1, w - kw + 1
    patches = [x[:, :, i:i + ho, j:j + wo] for i in range(kh) for j in range(kw)]
    col = jnp.stack(patches, axis=2)                      # (N, Cin, kh*kw, Ho, Wo)
    return col.reshape(n, cin * kh * kw, ho * wo)


def _interp_matrix_1d(in_size, out_size, scale):
    # PyTorch bilinear, align_corners=False
    o = jnp.arange(out_size, dtype=jnp.float32)
    src = jnp.maximum((o + 0.5) / scale - 0.5, 0.0)
    i0 = jnp.floor(src).astype(jnp.int32)
    i1 = jnp.minimum(i0 + 1, in_size - 1)
    lam = src - i0.astype(jnp.float32)
    m = jnp.zeros((out_size, in_size), jnp.float32)
    m = m.at[jnp.arange(out_size), i0].add(1.0 - lam)
    m = m.at[jnp.arange(out_size), i1].add(lam)
    return m


def _device_kind():
    try:
        return jax.devices()[0].device_kind.lower()
    except Exception:
        return ""


def _step_vmem_bytes(tc, n, kdim, npo_pad, po, pu_pad):
    invariant = 2 * (kdim * npo_pad + po * pu_pad)        # bf16 xcol + interp matrix
    per_tile = (4 * tc * kdim + 4 * tc * 128              # conv weight + packed params
                + 4 * 4 * n * tc * pu_pad)                # y, y_pre, 2 outputs (f32)
    scratch = 4 * n * tc * po                             # g regroup scratch (f32)
    return invariant + 2 * per_tile + scratch             # x2: double-buffered blocks


def _pick_cout_tile(cout, want_tiles, fits_fn, max_tc=256):
    divisors = sorted((d for d in range(1, cout + 1) if cout % d == 0), reverse=True)
    for d in divisors:
        if d > max_tc or cout // d < want_tiles:
            continue
        if fits_fn(d):
            return d
    return divisors[-1]


def _build_call(n, cout, kdim, po, pu, npo_pad, pu_pad, tc, vmem_limit,
                single_buffer_invariants):
    num_tiles = cout // tc
    inv_count = 1.0 / float(n * pu)                       # true (unpadded) count
    pad_fix = float(n * (pu_pad - pu)) * inv_count

    kern = functools.partial(crb_kernel, n_batch=n, po=po, inv_count=inv_count,
                             pad_fix=pad_fix, eps=1e-5)

    def invariant_spec(shape):
        if single_buffer_invariants:
            # Grid-invariant operands: skip Pallas' default double buffer.
            return pl.BlockSpec(shape, lambda i, s: (0, 0),
                                pipeline_mode=pl.Buffered(1))
        return pl.BlockSpec(shape, lambda i, s: (0, 0))

    flops = (2 * cout * kdim * n * po                     # conv matmul
             + 2 * n * cout * po * pu_pad                 # upsample matmul
             + 14 * n * cout * pu_pad)                    # elementwise + BN
    bytes_accessed = (4 * (cout * kdim + cout * 128 + 4 * n * cout * pu_pad)
                      + 2 * (kdim * npo_pad + po * pu_pad) + 8)

    return pl.pallas_call(
        kern,
        out_shape=(jax.ShapeDtypeStruct((n, cout, pu_pad), jnp.float32),
                   jax.ShapeDtypeStruct((n, cout, pu_pad), jnp.float32)),
        grid_spec=pltpu.PrefetchScalarGridSpec(
            num_scalar_prefetch=1,                        # [delta, weight_y] -> SMEM
            grid=(num_tiles,),
            in_specs=[
                invariant_spec((kdim, npo_pad)),                       # xcol (bf16)
                pl.BlockSpec((tc, kdim), lambda i, s: (i, 0)),         # conv weight
                invariant_spec((po, pu_pad)),                          # interp M^T (bf16)
                pl.BlockSpec((tc, 128), lambda i, s: (i, 0)),          # bias/gamma/beta
                pl.BlockSpec((n, tc, pu_pad), lambda i, s: (0, i, 0)),  # y
                pl.BlockSpec((n, tc, pu_pad), lambda i, s: (0, i, 0)),  # y_pre_left
            ],
            out_specs=(pl.BlockSpec((n, tc, pu_pad), lambda i, s: (0, i, 0)),
                       pl.BlockSpec((n, tc, pu_pad), lambda i, s: (0, i, 0))),
            scratch_shapes=[pltpu.VMEM((n * tc, po), jnp.float32)],
        ),
        compiler_params=pltpu.CompilerParams(
            dimension_semantics=("parallel",),            # Cout tiles are independent
            vmem_limit_bytes=int(vmem_limit)),
        cost_estimate=pl.CostEstimate(flops=int(flops), transcendentals=int(cout),
                                      bytes_accessed=int(bytes_accessed)),
    )


# -----------------------------------------------------------------------------
# Forward wrapper (kept un-jitted so the single-buffer probe can fall back
# cleanly; callers can wrap the whole thing in jax.jit if desired).
# -----------------------------------------------------------------------------
def cr_b_forward(x, y, delta, weight_x, weight_y, scale, y_pre_left,
                 conv_w, conv_b, bn_gamma, bn_beta):
    n, cin, h, w = x.shape
    cout, _, kh, kw = conv_w.shape
    ho, wo = h - kh + 1, w - kw + 1
    hu, wu = int(ho * scale), int(wo * scale)
    po, pu = ho * wo, hu * wu
    kdim = cin * kh * kw

    npo_pad = _round_up(n * po, 128)
    pu_pad = _round_up(pu, 128)

    # ---- generation-aware tile / grid / VMEM choices -------------------------
    kind = _device_kind()
    is_v7 = ("v7" in kind) or ("tpu7" in kind)
    want_tiles = 2 if is_v7 else 1          # v7x: 2 TCs share the "parallel" grid axis
    vmem_cap = (48 << 20) if is_v7 else (100 << 20)

    def fits(tc_):
        return _step_vmem_bytes(tc_, n, kdim, npo_pad, po, pu_pad) <= vmem_cap // 2

    tc = _pick_cout_tile(cout, want_tiles, fits)
    step_bytes = _step_vmem_bytes(tc, n, kdim, npo_pad, po, pu_pad)
    vmem_limit = min(vmem_cap, max(4 * step_bytes, 16 << 20))

    # ---- operand staging ------------------------------------------------------
    # im2col with the batch stacked along the lane dim -> the conv is one lane-dense
    # matmul with no per-image Po padding.
    xcol = _im2col_batched(x, kh, kw)                              # (N, K, Po)
    xcol = jnp.transpose(xcol, (1, 0, 2)).reshape(kdim, n * po)    # (K, N*Po)
    xcol = jnp.pad(xcol, ((0, 0), (0, npo_pad - n * po))).astype(jnp.bfloat16)

    # weight_x folded into the conv weights (numerically identical, free).
    w_mat = (conv_w.reshape(cout, kdim) * weight_x).astype(jnp.float32)

    # conv bias / BN gamma / BN beta packed into one lane-dense side input.
    prm = jnp.zeros((cout, 128), jnp.float32)
    prm = prm.at[:, 0].set(conv_b)
    prm = prm.at[:, 1].set(bn_gamma)
    prm = prm.at[:, 2].set(bn_beta)

    # Bilinear interpolation matrix, transposed; bf16 (coeffs are exact k/16 values).
    m = jnp.kron(_interp_matrix_1d(ho, hu, scale),
                 _interp_matrix_1d(wo, wu, scale))                 # (Pu, Po)
    mt = jnp.pad(m.T, ((0, 0), (0, pu_pad - pu))).astype(jnp.bfloat16)

    # (N, C, H, W) -> (N, C, P): pure reshape; zero-pad the Pu lanes (the zeros keep
    # the BN statistics exact -- see kernel).
    y2 = jnp.pad(y.reshape(n, cout, pu), ((0, 0), (0, 0), (0, pu_pad - pu)))
    ypre2 = jnp.pad(y_pre_left.reshape(n, cout, pu),
                    ((0, 0), (0, 0), (0, pu_pad - pu)))

    scalars = jnp.array([delta, weight_y], dtype=jnp.float32)
    operands = (scalars, xcol, w_mat, mt, prm, y2, ypre2)

    try:
        call = _build_call(n, cout, kdim, po, pu, npo_pad, pu_pad, tc, vmem_limit,
                           single_buffer_invariants=True)
        y_next2, y_left2 = call(*operands)
        jax.block_until_ready((y_next2, y_left2))
    except Exception:
        # pl.Buffered(1) on the grid-invariant operands is an optional optimization;
        # fall back to the default double-buffered pipeline if it is rejected.
        call = _build_call(n, cout, kdim, po, pu, npo_pad, pu_pad, tc, vmem_limit,
                           single_buffer_invariants=False)
        y_next2, y_left2 = call(*operands)

    y_next = y_next2[:, :, :pu].reshape(n, cout, hu, wu)
    y_left = y_left2[:, :, :pu].reshape(n, cout, hu, wu)
    return y_next, y_left


# -----------------------------------------------------------------------------
# Pure-JAX reference (independent path: HIGHEST-precision conv + gather bilinear).
# -----------------------------------------------------------------------------
def _bilinear_up_ref(g, scale):
    n, c, h, w = g.shape
    hu, wu = int(h * scale), int(w * scale)

    def idx(out_size, in_size):
        o = jnp.arange(out_size, dtype=jnp.float32)
        src = jnp.maximum((o + 0.5) / scale - 0.5, 0.0)
        i0 = jnp.floor(src).astype(jnp.int32)
        i1 = jnp.minimum(i0 + 1, in_size - 1)
        return i0, i1, src - i0.astype(jnp.float32)

    hi0, hi1, lh = idx(hu, h)
    wi0, wi1, lw = idx(wu, w)
    g_h0, g_h1 = g[:, :, hi0, :], g[:, :, hi1, :]
    a, b = g_h0[:, :, :, wi0], g_h0[:, :, :, wi1]
    cc, d = g_h1[:, :, :, wi0], g_h1[:, :, :, wi1]
    lh = lh[None, None, :, None]
    lw = lw[None, None, None, :]
    return (1 - lh) * ((1 - lw) * a + lw * b) + lh * ((1 - lw) * cc + lw * d)


def cr_b_reference(x, y, delta, weight_x, weight_y, scale, y_pre_left,
                   conv_w, conv_b, bn_gamma, bn_beta):
    g = lax.conv_general_dilated(weight_x * x, conv_w, (1, 1), "VALID",
                                 dimension_numbers=("NCHW", "OIHW", "NCHW"),
                                 precision=lax.Precision.HIGHEST)
    g = jnp.maximum(g + conv_b[None, :, None, None], 0.0)
    up = _bilinear_up_ref(g, scale)
    z = weight_y * y + up
    mean = jnp.mean(z, axis=(0, 2, 3), keepdims=True)
    var = jnp.mean((z - mean) ** 2, axis=(0, 2, 3), keepdims=True)
    z_bn = (bn_gamma[None, :, None, None] * (z - mean) / jnp.sqrt(var + 1e-5)
            + bn_beta[None, :, None, None])
    y_left = delta * weight_y * y + delta * z_bn
    y_next = y - 1.5 * y_left + 0.5 * y_pre_left
    return y_next, y_left


if __name__ == "__main__":
    key = jax.random.PRNGKey(0)
    k_x, k_y, k_yp, k_w, k_b, k_g, k_be = jax.random.split(key, 7)

    N, C_IN, C_OUT, H, W, KS, SCALE = 2, 4, 16, 10, 10, 3, 2
    HO, WO = H - KS + 1, W - KS + 1
    HU, WU = HO * SCALE, WO * SCALE

    x = jax.random.normal(k_x, (N, C_IN, H, W), jnp.float32)
    y = jax.random.normal(k_y, (N, C_OUT, HU, WU), jnp.float32)
    y_pre_left = jax.random.normal(k_yp, (N, C_OUT, HU, WU), jnp.float32)

    # deterministic synthetic parameters (not a checkpoint)
    conv_w = 0.1 * jax.random.normal(k_w, (C_OUT, C_IN, KS, KS), jnp.float32)
    conv_b = 0.1 * jax.random.normal(k_b, (C_OUT,), jnp.float32)
    bn_gamma = 1.0 + 0.1 * jax.random.normal(k_g, (C_OUT,), jnp.float32)
    bn_beta = 0.1 * jax.random.normal(k_be, (C_OUT,), jnp.float32)

    delta, weight_x, weight_y = 0.1, 0.5, 0.8

    y_next, y_left = cr_b_forward(x, y, delta, weight_x, weight_y, SCALE,
                                  y_pre_left, conv_w, conv_b, bn_gamma, bn_beta)
    jax.block_until_ready((y_next, y_left))

    y_next_ref, y_left_ref = cr_b_reference(x, y, delta, weight_x, weight_y, SCALE,
                                            y_pre_left, conv_w, conv_b,
                                            bn_gamma, bn_beta)

    assert y_next.shape == (N, C_OUT, HU, WU) and y_left.shape == (N, C_OUT, HU, WU)
    # Tolerance covers bf16-staged MXU operands (equivalent to DEFAULT single-pass
    # bf16 matmuls) vs. the HIGHEST-precision f32 reference.
    assert jnp.allclose(y_left, y_left_ref, atol=3e-3, rtol=3e-3), \
        float(jnp.max(jnp.abs(y_left - y_left_ref)))
    assert jnp.allclose(y_next, y_next_ref, atol=3e-3, rtol=3e-3), \
        float(jnp.max(jnp.abs(y_next - y_next_ref)))
    print("KERNEL_OK")
</pallas_src>

<mosaic_0001>
module attributes {stable_mosaic.version = 11 : i64} {
  func.func @crb_kernel(%arg0: i32, %arg1: memref<2xf32, #tpu.memory_space<smem>>, %arg2: memref<36x128xbf16, #tpu.memory_space<vmem>>, %arg3: memref<16x36xf32, #tpu.memory_space<vmem>>, %arg4: memref<64x256xbf16, #tpu.memory_space<vmem>>, %arg5: memref<16x128xf32, #tpu.memory_space<vmem>>, %arg6: memref<2x16x256xf32, #tpu.memory_space<vmem>>, %arg7: memref<2x16x256xf32, #tpu.memory_space<vmem>>, %arg8: memref<2x16x256xf32, #tpu.memory_space<vmem>>, %arg9: memref<2x16x256xf32, #tpu.memory_space<vmem>>, %arg10: memref<32x64xf32, #tpu.memory_space<vmem>>) attributes {dimension_semantics = [#tpu.dimension_semantics<parallel>], iteration_bounds = array<i64: 1>, scalar_prefetch = 1 : i64, scratch_operands = 1 : i64, tpu.core_type = #tpu.core_type<tc>, window_params = [{pipeline_mode = #tpu.pipeline_mode<synchronous>, transform_indices = @transform_0, window_bounds = array<i64: 36, 128>}, {transform_indices = @transform_1, window_bounds = array<i64: 16, 36>}, {pipeline_mode = #tpu.pipeline_mode<synchronous>, transform_indices = @transform_2, window_bounds = array<i64: 64, 256>}, {transform_indices = @transform_3, window_bounds = array<i64: 16, 128>}, {transform_indices = @transform_4, window_bounds = array<i64: 2, 16, 256>}, {transform_indices = @transform_5, window_bounds = array<i64: 2, 16, 256>}, {transform_indices = @transform_6, window_bounds = array<i64: 2, 16, 256>}, {transform_indices = @transform_7, window_bounds = array<i64: 2, 16, 256>}]} {
    %c0 = arith.constant 0 : index
    %0 = memref.load %arg1[%c0] : memref<2xf32, #tpu.memory_space<smem>>
    %c1 = arith.constant 1 : index
    %1 = memref.load %arg1[%c1] : memref<2xf32, #tpu.memory_space<smem>>
    %c0_0 = arith.constant 0 : index
    %c0_1 = arith.constant 0 : index
    %2 = vector.load %arg5[%c0_0, %c0_1] : memref<16x128xf32, #tpu.memory_space<vmem>>, vector<16x128xf32>
    %3 = vector.extract_strided_slice %2 {offsets = [0, 0], sizes = [16, 1], strides = [1, 1]} : vector<16x128xf32> to vector<16x1xf32>
    %4 = vector.extract_strided_slice %2 {offsets = [0, 1], sizes = [16, 1], strides = [1, 1]} : vector<16x128xf32> to vector<16x1xf32>
    %5 = vector.extract_strided_slice %2 {offsets = [0, 2], sizes = [16, 1], strides = [1, 1]} : vector<16x128xf32> to vector<16x1xf32>
    %c0_2 = arith.constant 0 : index
    %c0_3 = arith.constant 0 : index
    %6 = vector.load %arg3[%c0_2, %c0_3] : memref<16x36xf32, #tpu.memory_space<vmem>>, vector<16x36xf32>
    %7 = arith.truncf %6 : vector<16x36xf32> to vector<16x36xbf16>
    %c0_4 = arith.constant 0 : index
    %c0_5 = arith.constant 0 : index
    %8 = vector.load %arg2[%c0_4, %c0_5] : memref<36x128xbf16, #tpu.memory_space<vmem>>, vector<36x128xbf16>
    %cst = arith.constant dense<0.000000e+00> : vector<16x128xf32>
    %9 = tpu.matmul %7, %8, %cst {dimension_numbers = #tpu.dot_dimension_numbers<[1], [0], [0], [1], [0, 0, 1, 1], [], []>} : vector<16x36xbf16>, vector<36x128xbf16>, vector<16x128xf32> -> vector<16x128xf32>
    %10 = vector.broadcast %3 : vector<16x1xf32> to vector<16x128xf32>
    %11 = arith.addf %9, %10 : vector<16x128xf32>
    %cst_6 = arith.constant 0.000000e+00 : f32
    %12 = vector.broadcast %cst_6 : f32 to vector<16x128xf32>
    %13 = arith.maximumf %11, %12 : vector<16x128xf32>
    %14 = vector.extract_strided_slice %13 {offsets = [0, 0], sizes = [16, 64], strides = [1, 1]} : vector<16x128xf32> to vector<16x64xf32>
    %c0_7 = arith.constant 0 : index
    %c0_8 = arith.constant 0 : index
    %15 = vector.load %arg10[%c0_7, %c0_8] : memref<32x64xf32, #tpu.memory_space<vmem>>, vector<16x64xf32>
    tpu.vector_store %arg10[%c0_7, %c0_8], %14 {strides = array<i32>} : memref<32x64xf32, #tpu.memory_space<vmem>>, vector<16x64xf32>,
    %16 = vector.extract_strided_slice %13 {offsets = [0, 64], sizes = [16, 64], strides = [1, 1]} : vector<16x128xf32> to vector<16x64xf32>
    %c16 = arith.constant 16 : index
    %c0_9 = arith.constant 0 : index
    %17 = vector.load %arg10[%c16, %c0_9] : memref<32x64xf32, #tpu.memory_space<vmem>>, vector<16x64xf32>
    tpu.vector_store %arg10[%c16, %c0_9], %16 {strides = array<i32>} : memref<32x64xf32, #tpu.memory_space<vmem>>, vector<16x64xf32>,
    %c0_10 = arith.constant 0 : index
    %c0_11 = arith.constant 0 : index
    %18 = vector.load %arg10[%c0_10, %c0_11] : memref<32x64xf32, #tpu.memory_space<vmem>>, vector<32x64xf32>
    %19 = arith.truncf %18 : vector<32x64xf32> to vector<32x64xbf16>
    %c0_12 = arith.constant 0 : index
    %c0_13 = arith.constant 0 : index
    %20 = vector.load %arg4[%c0_12, %c0_13] : memref<64x256xbf16, #tpu.memory_space<vmem>>, vector<64x256xbf16>
    %cst_14 = arith.constant dense<0.000000e+00> : vector<32x256xf32>
    %21 = tpu.matmul %19, %20, %cst_14 {dimension_numbers = #tpu.dot_dimension_numbers<[1], [0], [0], [1], [0, 0, 1, 1], [], []>} : vector<32x64xbf16>, vector<64x256xbf16>, vector<32x256xf32> -> vector<32x256xf32>
    %22 = vector.shape_cast %21 : vector<32x256xf32> to vector<2x16x256xf32>
    %c0_15 = arith.constant 0 : index
    %c0_16 = arith.constant 0 : index
    %c0_17 = arith.constant 0 : index
    %23 = vector.load %arg6[%c0_15, %c0_16, %c0_17] : memref<2x16x256xf32, #tpu.memory_space<vmem>>, vector<2x16x256xf32>
    %24 = vector.broadcast %1 : f32 to vector<2x16x256xf32>
    %25 = arith.mulf %24, %23 : vector<2x16x256xf32>
    %26 = arith.addf %25, %22 : vector<2x16x256xf32>
    %cst_18 = arith.constant dense<0.000000e+00> : vector<2x16xf32>
    %27 = vector.multi_reduction <add>, %26, %cst_18 [2] : vector<2x16x256xf32> to vector<2x16xf32>
    %28 = vector.shape_cast %27 : vector<2x16xf32> to vector<2x16x1xf32>
    %cst_19 = arith.constant dense<0.000000e+00> : vector<16x1xf32>
    %29 = vector.multi_reduction <add>, %28, %cst_19 [0] : vector<2x16x1xf32> to vector<16x1xf32>
    %30 = vector.shape_cast %29 : vector<16x1xf32> to vector<1x16x1xf32>
    %cst_20 = arith.constant 0.001953125 : f32
    %31 = vector.broadcast %cst_20 : f32 to vector<1x16x1xf32>
    %32 = arith.mulf %30, %31 : vector<1x16x1xf32>
    %33 = vector.broadcast %32 : vector<1x16x1xf32> to vector<2x16x256xf32>
    %34 = arith.subf %26, %33 : vector<2x16x256xf32>
    %35 = arith.mulf %34, %34 : vector<2x16x256xf32>
    %cst_21 = arith.constant dense<0.000000e+00> : vector<2x16xf32>
    %36 = vector.multi_reduction <add>, %35, %cst_21 [2] : vector<2x16x256xf32> to vector<2x16xf32>
    %37 = vector.shape_cast %36 : vector<2x16xf32> to vector<2x16x1xf32>
    %cst_22 = arith.constant dense<0.000000e+00> : vector<16x1xf32>
    %38 = vector.multi_reduction <add>, %37, %cst_22 [0] : vector<2x16x1xf32> to vector<16x1xf32>
    %39 = vector.shape_cast %38 : vector<16x1xf32> to vector<1x16x1xf32>
    %cst_23 = arith.constant 0.001953125 : f32
    %40 = vector.broadcast %cst_23 : f32 to vector<1x16x1xf32>
    %41 = arith.mulf %39, %40 : vector<1x16x1xf32>
    %cst_24 = arith.constant 0.000000e+00 : f32
    %42 = vector.broadcast %cst_24 : f32 to vector<1x16x1xf32>
    %43 = arith.mulf %42, %32 : vector<1x16x1xf32>
    %44 = arith.mulf %43, %32 : vector<1x16x1xf32>
    %45 = arith.subf %41, %44 : vector<1x16x1xf32>
    %46 = vector.shape_cast %4 : vector<16x1xf32> to vector<1x16x1xf32>
    %cst_25 = arith.constant 9.99999974E-6 : f32
    %47 = vector.broadcast %cst_25 : f32 to vector<1x16x1xf32>
    %48 = arith.addf %45, %47 : vector<1x16x1xf32>
    %49 = math.rsqrt %48 : vector<1x16x1xf32>
    %50 = arith.mulf %46, %49 : vector<1x16x1xf32>
    %51 = vector.broadcast %50 : vector<1x16x1xf32> to vector<2x16x256xf32>
    %52 = arith.mulf %34, %51 : vector<2x16x256xf32>
    %53 = vector.shape_cast %5 : vector<16x1xf32> to vector<1x16x1xf32>
    %54 = vector.broadcast %53 : vector<1x16x1xf32> to vector<2x16x256xf32>
    %55 = arith.addf %52, %54 : vector<2x16x256xf32>
    %56 = arith.mulf %0, %1 : f32
    %57 = vector.broadcast %56 : f32 to vector<2x16x256xf32>
    %58 = arith.mulf %57, %23 : vector<2x16x256xf32>
    %59 = vector.broadcast %0 : f32 to vector<2x16x256xf32>
    %60 = arith.mulf %59, %55 : vector<2x16x256xf32>
    %61 = arith.addf %58, %60 : vector<2x16x256xf32>
    %c0_26 = arith.constant 0 : index
    %c0_27 = arith.constant 0 : index
    %c0_28 = arith.constant 0 : index
    %62 = vector.load %arg9[%c0_26, %c0_27, %c0_28] : memref<2x16x256xf32, #tpu.memory_space<vmem>>, vector<2x16x256xf32>
    tpu.vector_store %arg9[%c0_26, %c0_27, %c0_28], %61 {strides = array<i32>} : memref<2x16x256xf32, #tpu.memory_space<vmem>>, vector<2x16x256xf32>,
    %cst_29 = arith.constant 1.500000e+00 : f32
    %63 = vector.broadcast %cst_29 : f32 to vector<2x16x256xf32>
    %64 = arith.mulf %63, %61 : vector<2x16x256xf32>
    %65 = arith.subf %23, %64 : vector<2x16x256xf32>
    %c0_30 = arith.constant 0 : index
    %c0_31 = arith.constant 0 : index
    %c0_32 = arith.constant 0 : index
    %66 = vector.load %arg7[%c0_30, %c0_31, %c0_32] : memref<2x16x256xf32, #tpu.memory_space<vmem>>, vector<2x16x256xf32>
    %cst_33 = arith.constant 5.000000e-01 : f32
    %67 = vector.broadcast %cst_33 : f32 to vector<2x16x256xf32>
    %68 = arith.mulf %67, %66 : vector<2x16x256xf32>
    %69 = arith.addf %65, %68 : vector<2x16x256xf32>
    %c0_34 = arith.constant 0 : index
    %c0_35 = arith.constant 0 : index
    %c0_36 = arith.constant 0 : index
    %70 = vector.load %arg8[%c0_34, %c0_35, %c0_36] : memref<2x16x256xf32, #tpu.memory_space<vmem>>, vector<2x16x256xf32>
    tpu.vector_store %arg8[%c0_34, %c0_35, %c0_36], %69 {strides = array<i32>} : memref<2x16x256xf32, #tpu.memory_space<vmem>>, vector<2x16x256xf32>,
    return
  }
  func.func @transform_0(%arg0: i32, %arg1: memref<2xf32, #tpu.memory_space<smem>>) -> (i32, i32) {
    %c0_i32 = arith.constant 0 : i32
    %c0_i32_0 = arith.constant 0 : i32
    %c0_i32_1 = arith.constant 0 : i32
    return %c0_i32, %c0_i32_0 : i32, i32
  }
  func.func @transform_1(%arg0: i32, %arg1: memref<2xf32, #tpu.memory_space<smem>>) -> (i32, i32) {
    %c0_i32 = arith.constant 0 : i32
    %c0_i32_0 = arith.constant 0 : i32
    return %arg0, %c0_i32 : i32, i32
  }
  func.func @transform_2(%arg0: i32, %arg1: memref<2xf32, #tpu.memory_space<smem>>) -> (i32, i32) {
    %c0_i32 = arith.constant 0 : i32
    %c0_i32_0 = arith.constant 0 : i32
    %c0_i32_1 = arith.constant 0 : i32
    return %c0_i32, %c0_i32_0 : i32, i32
  }
  func.func @transform_3(%arg0: i32, %arg1: memref<2xf32, #tpu.memory_space<smem>>) -> (i32, i32) {
    %c0_i32 = arith.constant 0 : i32
    %c0_i32_0 = arith.constant 0 : i32
    return %arg0, %c0_i32 : i32, i32
  }
  func.func @transform_4(%arg0: i32, %arg1: memref<2xf32, #tpu.memory_space<smem>>) -> (i32, i32, i32) {
    %c0_i32 = arith.constant 0 : i32
    %c0_i32_0 = arith.constant 0 : i32
    %c0_i32_1 = arith.constant 0 : i32
    return %c0_i32, %arg0, %c0_i32_0 : i32, i32, i32
  }
  func.func @transform_5(%arg0: i32, %arg1: memref<2xf32, #tpu.memory_space<smem>>) -> (i32, i32, i32) {
    %c0_i32 = arith.constant 0 : i32
    %c0_i32_0 = arith.constant 0 : i32
    %c0_i32_1 = arith.constant 0 : i32
    return %c0_i32, %arg0, %c0_i32_0 : i32, i32, i32
  }
  func.func @transform_6(%arg0: i32, %arg1: memref<2xf32, #tpu.memory_space<smem>>) -> (i32, i32, i32) {
    %c0_i32 = arith.constant 0 : i32
    %c0_i32_0 = arith.constant 0 : i32
    %c0_i32_1 = arith.constant 0 : i32
    return %c0_i32, %arg0, %c0_i32_0 : i32, i32, i32
  }
  func.func @transform_7(%arg0: i32, %arg1: memref<2xf32, #tpu.memory_space<smem>>) -> (i32, i32, i32) {
    %c0_i32 = arith.constant 0 : i32
    %c0_i32_0 = arith.constant 0 : i32
    %c0_i32_1 = arith.constant 0 : i32
    return %c0_i32, %arg0, %c0_i32_0 : i32, i32, i32
  }
}

module attributes {stable_mosaic.version = 11 : i64} {
  func.func @crb_kernel(%arg0: i32, %arg1: memref<2xf32, #tpu.memory_space<smem>>, %arg2: memref<36x128xbf16, #tpu.memory_space<vmem>>, %arg3: memref<16x36xf32, #tpu.memory_space<vmem>>, %arg4: memref<64x256xbf16, #tpu.memory_space<vmem>>, %arg5: memref<16x128xf32, #tpu.memory_space<vmem>>, %arg6: memref<2x16x256xf32, #tpu.memory_space<vmem>>, %arg7: memref<2x16x256xf32, #tpu.memory_space<vmem>>, %arg8: memref<2x16x256xf32, #tpu.memory_space<vmem>>, %arg9: memref<2x16x256xf32, #tpu.memory_space<vmem>>, %arg10: memref<32x64xf32, #tpu.memory_space<vmem>>) attributes {dimension_semantics = [#tpu.dimension_semantics<parallel>], iteration_bounds = array<i64: 1>, scalar_prefetch = 1 : i64, scratch_operands = 1 : i64, tpu.core_type = #tpu.core_type<tc>, window_params = [{pipeline_mode = #tpu.pipeline_mode<synchronous>, transform_indices = @transform_0, window_bounds = array<i64: 36, 128>}, {transform_indices = @transform_1, window_bounds = array<i64: 16, 36>}, {pipeline_mode = #tpu.pipeline_mode<synchronous>, transform_indices = @transform_2, window_bounds = array<i64: 64, 256>}, {transform_indices = @transform_3, window_bounds = array<i64: 16, 128>}, {transform_indices = @transform_4, window_bounds = array<i64: 2, 16, 256>}, {transform_indices = @transform_5, window_bounds = array<i64: 2, 16, 256>}, {transform_indices = @transform_6, window_bounds = array<i64: 2, 16, 256>}, {transform_indices = @transform_7, window_bounds = array<i64: 2, 16, 256>}]} {
    %c0 = arith.constant 0 : index
    %0 = memref.load %arg1[%c0] : memref<2xf32, #tpu.memory_space<smem>>
    %c1 = arith.constant 1 : index
    %1 = memref.load %arg1[%c1] : memref<2xf32, #tpu.memory_space<smem>>
    %c0_0 = arith.constant 0 : index
    %c0_1 = arith.constant 0 : index
    %2 = vector.load %arg5[%c0_0, %c0_1] : memref<16x128xf32, #tpu.memory_space<vmem>>, vector<16x128xf32>
    %3 = vector.extract_strided_slice %2 {offsets = [0, 0], sizes = [16, 1], strides = [1, 1]} : vector<16x128xf32> to vector<16x1xf32>
    %4 = vector.extract_strided_slice %2 {offsets = [0, 1], sizes = [16, 1], strides = [1, 1]} : vector<16x128xf32> to vector<16x1xf32>
    %5 = vector.extract_strided_slice %2 {offsets = [0, 2], sizes = [16, 1], strides = [1, 1]} : vector<16x128xf32> to vector<16x1xf32>
    %c0_2 = arith.constant 0 : index
    %c0_3 = arith.constant 0 : index
    %6 = vector.load %arg3[%c0_2, %c0_3] : memref<16x36xf32, #tpu.memory_space<vmem>>, vector<16x36xf32>
    %7 = arith.truncf %6 : vector<16x36xf32> to vector<16x36xbf16>
    %c0_4 = arith.constant 0 : index
    %c0_5 = arith.constant 0 : index
    %8 = vector.load %arg2[%c0_4, %c0_5] : memref<36x128xbf16, #tpu.memory_space<vmem>>, vector<36x128xbf16>
    %cst = arith.constant dense<0.000000e+00> : vector<16x128xf32>
    %9 = tpu.matmul %7, %8, %cst {dimension_numbers = #tpu.dot_dimension_numbers<[1], [0], [0], [1], [0, 0, 1, 1], [], []>} : vector<16x36xbf16>, vector<36x128xbf16>, vector<16x128xf32> -> vector<16x128xf32>
    %10 = vector.broadcast %3 : vector<16x1xf32> to vector<16x128xf32>
    %11 = arith.addf %9, %10 : vector<16x128xf32>
    %cst_6 = arith.constant 0.000000e+00 : f32
    %12 = vector.broadcast %cst_6 : f32 to vector<16x128xf32>
    %13 = arith.maximumf %11, %12 : vector<16x128xf32>
    %14 = vector.extract_strided_slice %13 {offsets = [0, 0], sizes = [16, 64], strides = [1, 1]} : vector<16x128xf32> to vector<16x64xf32>
    %c0_7 = arith.constant 0 : index
    %c0_8 = arith.constant 0 : index
    %15 = vector.load %arg10[%c0_7, %c0_8] : memref<32x64xf32, #tpu.memory_space<vmem>>, vector<16x64xf32>
    tpu.vector_store %arg10[%c0_7, %c0_8], %14 {strides = array<i32>} : memref<32x64xf32, #tpu.memory_space<vmem>>, vector<16x64xf32>,
    %16 = vector.extract_strided_slice %13 {offsets = [0, 64], sizes = [16, 64], strides = [1, 1]} : vector<16x128xf32> to vector<16x64xf32>
    %c16 = arith.constant 16 : index
    %c0_9 = arith.constant 0 : index
    %17 = vector.load %arg10[%c16, %c0_9] : memref<32x64xf32, #tpu.memory_space<vmem>>, vector<16x64xf32>
    tpu.vector_store %arg10[%c16, %c0_9], %16 {strides = array<i32>} : memref<32x64xf32, #tpu.memory_space<vmem>>, vector<16x64xf32>,
    %c0_10 = arith.constant 0 : index
    %c0_11 = arith.constant 0 : index
    %18 = vector.load %arg10[%c0_10, %c0_11] : memref<32x64xf32, #tpu.memory_space<vmem>>, vector<32x64xf32>
    %19 = arith.truncf %18 : vector<32x64xf32> to vector<32x64xbf16>
    %c0_12 = arith.constant 0 : index
    %c0_13 = arith.constant 0 : index
    %20 = vector.load %arg4[%c0_12, %c0_13] : memref<64x256xbf16, #tpu.memory_space<vmem>>, vector<64x256xbf16>
    %cst_14 = arith.constant dense<0.000000e+00> : vector<32x256xf32>
    %21 = tpu.matmul %19, %20, %cst_14 {dimension_numbers = #tpu.dot_dimension_numbers<[1], [0], [0], [1], [0, 0, 1, 1], [], []>} : vector<32x64xbf16>, vector<64x256xbf16>, vector<32x256xf32> -> vector<32x256xf32>
    %22 = vector.shape_cast %21 : vector<32x256xf32> to vector<2x16x256xf32>
    %c0_15 = arith.constant 0 : index
    %c0_16 = arith.constant 0 : index
    %c0_17 = arith.constant 0 : index
    %23 = vector.load %arg6[%c0_15, %c0_16, %c0_17] : memref<2x16x256xf32, #tpu.memory_space<vmem>>, vector<2x16x256xf32>
    %24 = vector.broadcast %1 : f32 to vector<2x16x256xf32>
    %25 = arith.mulf %24, %23 : vector<2x16x256xf32>
    %26 = arith.addf %25, %22 : vector<2x16x256xf32>
    %cst_18 = arith.constant dense<0.000000e+00> : vector<2x16xf32>
    %27 = vector.multi_reduction <add>, %26, %cst_18 [2] : vector<2x16x256xf32> to vector<2x16xf32>
    %28 = vector.shape_cast %27 : vector<2x16xf32> to vector<2x16x1xf32>
    %cst_19 = arith.constant dense<0.000000e+00> : vector<16x1xf32>
    %29 = vector.multi_reduction <add>, %28, %cst_19 [0] : vector<2x16x1xf32> to vector<16x1xf32>
    %30 = vector.shape_cast %29 : vector<16x1xf32> to vector<1x16x1xf32>
    %cst_20 = arith.constant 0.001953125 : f32
    %31 = vector.broadcast %cst_20 : f32 to vector<1x16x1xf32>
    %32 = arith.mulf %30, %31 : vector<1x16x1xf32>
    %33 = vector.broadcast %32 : vector<1x16x1xf32> to vector<2x16x256xf32>
    %34 = arith.subf %26, %33 : vector<2x16x256xf32>
    %35 = arith.mulf %34, %34 : vector<2x16x256xf32>
    %cst_21 = arith.constant dense<0.000000e+00> : vector<2x16xf32>
    %36 = vector.multi_reduction <add>, %35, %cst_21 [2] : vector<2x16x256xf32> to vector<2x16xf32>
    %37 = vector.shape_cast %36 : vector<2x16xf32> to vector<2x16x1xf32>
    %cst_22 = arith.constant dense<0.000000e+00> : vector<16x1xf32>
    %38 = vector.multi_reduction <add>, %37, %cst_22 [0] : vector<2x16x1xf32> to vector<16x1xf32>
    %39 = vector.shape_cast %38 : vector<16x1xf32> to vector<1x16x1xf32>
    %cst_23 = arith.constant 0.001953125 : f32
    %40 = vector.broadcast %cst_23 : f32 to vector<1x16x1xf32>
    %41 = arith.mulf %39, %40 : vector<1x16x1xf32>
    %cst_24 = arith.constant 0.000000e+00 : f32
    %42 = vector.broadcast %cst_24 : f32 to vector<1x16x1xf32>
    %43 = arith.mulf %42, %32 : vector<1x16x1xf32>
    %44 = arith.mulf %43, %32 : vector<1x16x1xf32>
    %45 = arith.subf %41, %44 : vector<1x16x1xf32>
    %46 = vector.shape_cast %4 : vector<16x1xf32> to vector<1x16x1xf32>
    %cst_25 = arith.constant 9.99999974E-6 : f32
    %47 = vector.broadcast %cst_25 : f32 to vector<1x16x1xf32>
    %48 = arith.addf %45, %47 : vector<1x16x1xf32>
    %49 = math.rsqrt %48 : vector<1x16x1xf32>
    %50 = arith.mulf %46, %49 : vector<1x16x1xf32>
    %51 = vector.broadcast %50 : vector<1x16x1xf32> to vector<2x16x256xf32>
    %52 = arith.mulf %34, %51 : vector<2x16x256xf32>
    %53 = vector.shape_cast %5 : vector<16x1xf32> to vector<1x16x1xf32>
    %54 = vector.broadcast %53 : vector<1x16x1xf32> to vector<2x16x256xf32>
    %55 = arith.addf %52, %54 : vector<2x16x256xf32>
    %56 = arith.mulf %0, %1 : f32
    %57 = vector.broadcast %56 : f32 to vector<2x16x256xf32>
    %58 = arith.mulf %57, %23 : vector<2x16x256xf32>
    %59 = vector.broadcast %0 : f32 to vector<2x16x256xf32>
    %60 = arith.mulf %59, %55 : vector<2x16x256xf32>
    %61 = arith.addf %58, %60 : vector<2x16x256xf32>
    %c0_26 = arith.constant 0 : index
    %c0_27 = arith.constant 0 : index
    %c0_28 = arith.constant 0 : index
    %62 = vector.load %arg9[%c0_26, %c0_27, %c0_28] : memref<2x16x256xf32, #tpu.memory_space<vmem>>, vector<2x16x256xf32>
    tpu.vector_store %arg9[%c0_26, %c0_27, %c0_28], %61 {strides = array<i32>} : memref<2x16x256xf32, #tpu.memory_space<vmem>>, vector<2x16x256xf32>,
    %cst_29 = arith.constant 1.500000e+00 : f32
    %63 = vector.broadcast %cst_29 : f32 to vector<2x16x256xf32>
    %64 = arith.mulf %63, %61 : vector<2x16x256xf32>
    %65 = arith.subf %23, %64 : vector<2x16x256xf32>
    %c0_30 = arith.constant 0 : index
    %c0_31 = arith.constant 0 : index
    %c0_32 = arith.constant 0 : index
    %66 = vector.load %arg7[%c0_30, %c0_31, %c0_32] : memref<2x16x256xf32, #tpu.memory_space<vmem>>, vector<2x16x256xf32>
    %cst_33 = arith.constant 5.000000e-01 : f32
    %67 = vector.broadcast %cst_33 : f32 to vector<2x16x256xf32>
    %68 = arith.mulf %67, %66 : vector<2x16x256xf32>
    %69 = arith.addf %65, %68 : vector<2x16x256xf32>
    %c0_34 = arith.constant 0 : index
    %c0_35 = arith.constant 0 : index
    %c0_36 = arith.constant 0 : index
    %70 = vector.load %arg8[%c0_34, %c0_35, %c0_36] : memref<2x16x256xf32, #tpu.memory_space<vmem>>, vector<2x16x256xf32>
    tpu.vector_store %arg8[%c0_34, %c0_35, %c0_36], %69 {strides = array<i32>} : memref<2x16x256xf32, #tpu.memory_space<vmem>>, vector<2x16x256xf32>,
    return
  }
  func.func @transform_0(%arg0: i32, %arg1: memref<2xf32, #tpu.memory_space<smem>>) -> (i32, i32) {
    %c0_i32 = arith.constant 0 : i32
    %c0_i32_0 = arith.constant 0 : i32
    %c0_i32_1 = arith.constant 0 : i32
    return %c0_i32, %c0_i32_0 : i32, i32
  }
  func.func @transform_1(%arg0: i32, %arg1: memref<2xf32, #tpu.memory_space<smem>>) -> (i32, i32) {
    %c0_i32 = arith.constant 0 : i32
    %c0_i32_0 = arith.constant 0 : i32
    return %arg0, %c0_i32 : i32, i32
  }
  func.func @transform_2(%arg0: i32, %arg1: memref<2xf32, #tpu.memory_space<smem>>) -> (i32, i32) {
    %c0_i32 = arith.constant 0 : i32
    %c0_i32_0 = arith.constant 0 : i32
    %c0_i32_1 = arith.constant 0 : i32
    return %c0_i32, %c0_i32_0 : i32, i32
  }
  func.func @transform_3(%arg0: i32, %arg1: memref<2xf32, #tpu.memory_space<smem>>) -> (i32, i32) {
    %c0_i32 = arith.constant 0 : i32
    %c0_i32_0 = arith.constant 0 : i32
    return %arg0, %c0_i32 : i32, i32
  }
  func.func @transform_4(%arg0: i32, %arg1: memref<2xf32, #tpu.memory_space<smem>>) -> (i32, i32, i32) {
    %c0_i32 = arith.constant 0 : i32
    %c0_i32_0 = arith.constant 0 : i32
    %c0_i32_1 = arith.constant 0 : i32
    return %c0_i32, %arg0, %c0_i32_0 : i32, i32, i32
  }
  func.func @transform_5(%arg0: i32, %arg1: memref<2xf32, #tpu.memory_space<smem>>) -> (i32, i32, i32) {
    %c0_i32 = arith.constant 0 : i32
    %c0_i32_0 = arith.constant 0 : i32
    %c0_i32_1 = arith.constant 0 : i32
    return %c0_i32, %arg0, %c0_i32_0 : i32, i32, i32
  }
  func.func @transform_6(%arg0: i32, %arg1: memref<2xf32, #tpu.memory_space<smem>>) -> (i32, i32, i32) {
    %c0_i32 = arith.constant 0 : i32
    %c0_i32_0 = arith.constant 0 : i32
    %c0_i32_1 = arith.constant 0 : i32
    return %c0_i32, %arg0, %c0_i32_0 : i32, i32, i32
  }
  func.func @transform_7(%arg0: i32, %arg1: memref<2xf32, #tpu.memory_space<smem>>) -> (i32, i32, i32) {
    %c0_i32 = arith.constant 0 : i32
    %c0_i32_0 = arith.constant 0 : i32
    %c0_i32_1 = arith.constant 0 : i32
    return %c0_i32, %arg0, %c0_i32_0 : i32, i32, i32
  }
}

</mosaic_0001>

<bundles_post_ra>
// kernel: tpu_custom_call.1
= control target key start
LH: loop header
LB: loop body
LE: loop exit
PB: predicated region body
PF: predicated region fallthrough
CT: control target
= control target key end

     0   :  { %s873_s30 = smov [#allocation4]   ;;  %s1084_s0 = inlined_call_operand.hbm [shape: f32[2], index: 0, kind: input, shape index: {}]   ;;  %s1085_s1 = inlined_call_operand.hbm [shape: bf16[36,128], index: 1, kind: input, shape index: {}]   ;;  %s1086_s2 = inlined_call_operand.hbm [shape: f32[16,36], index: 2, kind: input, shape index: {}]   ;;  %s1087_s3 = inlined_call_operand.hbm [shape: bf16[64,256], index: 3, kind: input, shape index: {}]   ;;  %s1088_s4 = inlined_call_operand.hbm [shape: f32[16,128], index: 4, kind: input, shape index: {}]   ;;  %s1089_s5 = inlined_call_operand.hbm [shape: f32[2,16,256], index: 5, kind: input, shape index: {}]   ;;  %s1090_s6 = inlined_call_operand.hbm [shape: f32[2,16,256], index: 6, kind: input, shape index: {}]   ;;  %s1091_s7 = inlined_call_operand.hbm [shape: f32[2,16,256], index: 7, kind: output, shape index: {0}]   ;;  %s1092_s8 = inlined_call_operand.hbm [shape: f32[2,16,256], index: 8, kind: output, shape index: {1}]  }
   0x1   :  { %s15_s29 = sshll.u32 %s1084_s0, 4  ;;  %s16_s29 = int_to_ptr.hbm [resolvable:$true] %s15_s29 }
   0x2   :  { %18 = dma.hbm_to_smem %s16_s29, 16, %s873_s30, [#allocation3] }
   0x3   :  { %859 = dma.done.wait [#allocation3], 16 }
   0x4   :  { %860 = vsyncadd [#allocation3], 4294967280 }
   0x5   :  { %21 = sfence }
   0x6   :  { %22 = vsyncpa [#allocation6], 0 }
   0x7   :  { %23 = vsyncpa [#allocation9], 0 }
   0x8   :  { %24 = vsyncpa [#allocation12], 0 }
   0x9   :  { %25 = vsyncpa [#allocation15], 0 }
   0xa   :  { %26 = vsyncpa [#allocation7], 0  ;;  %s45_s11 = sshll.u32 %s1086_s2, 4  ;;  %s46_s11 = int_to_ptr.hbm [resolvable:$true] %s45_s11 }
   0xb   :  { %27 = vsyncpa [#allocation18], 0  ;;  %s874_s12 = smov [#allocation8]   ;;  %s71_s15 = sshll.u32 %s1088_s4, 4  ;;  %s72_s15 = int_to_ptr.hbm [resolvable:$true] %s71_s15 }
   0xc   :  { %s47_s13 = sshll.u32 %s874_s12, 4  ;;  %s875_s16 = smov 128   ;;  %s48_s13 = int_to_ptr.vmem [resolvable:$true] %s47_s13 }
   0xd   :  { %s876_s17 = smov 8   ;;  %s877_s18 = smov [#allocation11]  }
   0xe   :  { %53 = dma.hbm_to_vmem [thread:$0]  %s46_s11, 256, %s48_s13, [#allocation9], %s875_s16, %s875_s16, %s876_s17  }
   0xf   :  { %s73_s19 = sshll.u32 %s877_s18, 4  ;;  %s32_s22 = sshll.u32 %s1085_s1, 4  ;;  %s74_s19 = int_to_ptr.vmem [resolvable:$true] %s73_s19  ;;  %s33_s22 = int_to_ptr.hbm [resolvable:$true] %s32_s22 }
  0x10   :  { %79 = dma.hbm_to_vmem [thread:$0]  %s72_s15, 256, %s74_s19, [#allocation12], %s875_s16, %s875_s16, %s876_s17  }
  0x11   :  { %s878_s2 = smov [#allocation5]   ;;  %s58_s4 = sshll.u32 %s1087_s3, 4  ;;  %s59_s4 = int_to_ptr.hbm [resolvable:$true] %s58_s4 }
  0x12   :  { %s34_s23 = sshll.u32 %s878_s2, 4  ;;  %s879_s26 = smov 64   ;;  %s35_s23 = int_to_ptr.vmem [resolvable:$true] %s34_s23 }
  0x13   :  { %s880_s27 = smov 4   ;;  %s881_s28 = smov [#allocation10]  }
  0x14   :  { %40 = dma.hbm_to_vmem [thread:$0]  %s33_s22, 320, %s35_s23, [#allocation6], %s879_s26, %s879_s26, %s880_s27  }
  0x15   :  { %s60_s29 = sshll.u32 %s881_s28, 4  ;;  %s84_s9 = sshll.u32 %s1089_s5, 4  ;;  %s61_s29 = int_to_ptr.vmem [resolvable:$true] %s60_s29  ;;  %s85_s9 = int_to_ptr.hbm [resolvable:$true] %s84_s9 }
  0x16   :  { %66 = dma.hbm_to_vmem [thread:$0]  %s59_s4, 1024, %s61_s29, [#allocation9], %s875_s16, %s875_s16, %s876_s17  }
  0x17   :  { %s882_s10 = smov [#allocation13]   ;;  %s97_s13 = sshll.u32 %s1090_s6, 4  ;;  %s98_s13 = int_to_ptr.hbm [resolvable:$true] %s97_s13 }
  0x18   :  { %s86_s11 = sshll.u32 %s882_s10, 4  ;;  %s883_s0 = smov 256   ;;  %s87_s11 = int_to_ptr.vmem [resolvable:$true] %s86_s11 }
  0x19   :  { %s884_s14 = smov 16   ;;  %s885_s15 = smov [#allocation14]  }
  0x1a   :  { %92 = dma.hbm_to_vmem [thread:$0]  %s85_s9, 1024, %s87_s11, [#allocation12], %s883_s0, %s883_s0, %s884_s14  }
  0x1b   :  { %s99_s18 = sshll.u32 %s885_s15, 4  ;;  %s100_s18 = int_to_ptr.vmem [resolvable:$true] %s99_s18 }
  0x1c   :  { %105 = dma.hbm_to_vmem [thread:$0]  %s98_s13, 1024, %s100_s18, [#allocation15], %s883_s0, %s883_s0, %s884_s14  }
  0x1d   :  { %861 = dma.done.wait [#allocation6], 320  }
  0x1e   :  { %862 = vsyncadd [#allocation6], 4294966976 }
  0x1f   :  { %863 = dma.done.wait [#allocation9], 1280  }
  0x20   :  { %864 = vsyncadd [#allocation9], 4294966016 }
  0x21   :  { %865 = dma.done.wait [#allocation12], 1280  }
  0x22   :  { %866 = vsyncadd [#allocation12], 4294966016 }
  0x23   :  { %867 = dma.done.wait [#allocation15], 1024  }
  0x24   :  { %868 = vsyncadd [#allocation15], 4294966272  ;;  %v886_v0 = vmov 0   ;;  %v142_v1 = vld [vmem:[#allocation5 + $0x10] sm:$0x3]  ;;  %v965_v3 = vld [vmem:[#allocation11] sm:$0xff] }
  0x25   :  { %645 = vset.pattern.permute.xlu0 %v886_v0  ;;  %v162_v2 = vunpack.c.l.b16 %v142_v1  ;;  %vm172_vm0 = vcmask 1041408   ;;  %v610_v6 = vld [vmem:[#allocation5 + $0x8] sm:$0xff]  ;;  %v609_v8 = vld [vmem:[#allocation5] sm:$0xff]  ;;  %v135_v9 = vld [vmem:[#allocation8] sm:$0xff]  ;;  %vm168_vm1 = vcmask 293888   ;;  %vm192_vm2 = vcmask 523264  }
  0x26   :  { %145 = vperm.xlu0 %645, %v965_v3   ;;  %v968_v7 = vld [vmem:[#allocation11 + $0x8] sm:$0xff]  ;;  %v136_v10 = vld [vmem:[#allocation8 + $0x8] sm:$0xff]  ;;  %v599_v12 = vld [vmem:[#allocation10 + $0x30] sm:$0xf]  ;;  %s979_s5 = sld [smem:[#allocation4 + $0x1]]  ;;  %s889_s17 = smov [#allocation17]  }
  0x27   :  { %v165_v4 = vpack.c.b16 %v162_v2, %v162_v2  ;;  %v137_v11 = vpack.c.bf16 %v136_v10, %v135_v9  ;;  %v618_v13 = vld [vmem:[#allocation10 + $0x34] sm:$0xf0]  ;;  %v617_v14 = vld [vmem:[#allocation10 + $0x34] sm:$0xf]  ;;  %v601_v16 = vld [vmem:[#allocation10 + $0x38] sm:$0xf0] }
  0x28   :  { %v600_v15 = vor.u32 %v618_v13, %v599_v12  ;;  %v604_v17 = vor.u32 %v617_v14, %v601_v16  ;;  %v591_v18 = vld [vmem:[#allocation10 + $0x20] sm:$0xf]  ;;  %v616_v19 = vld [vmem:[#allocation10 + $0x24] sm:$0xf0]  ;;  %v615_v20 = vld [vmem:[#allocation10 + $0x24] sm:$0xf] }
  0x29   :  { %v174_v5 = vsel %vm172_vm0, %v165_v4, 0  ;;  %v592_v21 = vor.u32 %v616_v19, %v591_v18  ;;  %v593_v22 = vld [vmem:[#allocation10 + $0x28] sm:$0xf0]  ;;  %v583_v24 = vld [vmem:[#allocation10 + $0x10] sm:$0xf]  ;;  %v986_v54 = vld [vmem:[#allocation13 + $0x8] sm:$0xff] }
  0x2a   :  { %181 = vmatpush.bf16.msra.mxu0 %v174_v5  ;;  %269 = vmatpush.bf16.msra.mxu1 %v600_v15  ;;  %v596_v23 = vor.u32 %v615_v20, %v593_v22  ;;  %v614_v25 = vld [vmem:[#allocation10 + $0x14] sm:$0xf0]  ;;  %v613_v26 = vld [vmem:[#allocation10 + $0x14] sm:$0xf]  ;;  %v585_v28 = vld [vmem:[#allocation10 + $0x18] sm:$0xf0] }
  0x2b   :  { %619 = vmatpush.bf16.msra.mxu3 %v600_v15  ;;  %623 = vmatpush.bf16.msra.mxu2 %v604_v17  ;;  %v584_v27 = vor.u32 %v614_v25, %v583_v24  ;;  %v575_v29 = vld [vmem:[#allocation10] sm:$0xf]  ;;  %v612_v30 = vld [vmem:[#allocation10 + $0x4] sm:$0xf0]  ;;  %v588_v31 = vor.u32 %v613_v26, %v585_v28  ;;  %v611_v32 = vld [vmem:[#allocation10 + $0x4] sm:$0xf] }
  0x2c   :  { %v577_v33 = vld [vmem:[#allocation10 + $0x8] sm:$0xf0]  ;;  %v576_v34 = vor.u32 %v612_v30, %v575_v29  ;;  %v983_v52 = vld [vmem:[#allocation13] sm:$0xff]  ;;  %v311_v53 = vstv %s979_s5  ;;  %v990_v61 = vld [vmem:[#allocation13 + $0x10] sm:$0xff]  ;;  %s131_s6 = sld [smem:[#allocation4]]  ;;  %s1065_s19 = sshll.u32 %s889_s17, 4  ;;  %s541_s19 = int_to_ptr.vmem [resolvable:$true] %s1065_s19 }
  0x2d   :  { %v580_v35 = vor.u32 %v611_v32, %v577_v33  ;;  %v312_v55 = vmul.f32 %v311_v53, %v983_v52  ;;  %v313_v56 = vmul.f32 %v311_v53, %v986_v54  ;;  %v992_v62 = vld [vmem:[#allocation13 + $0x18] sm:$0xff]  ;;  %v314_v0 = vmul.f32 %v311_v53, %v990_v61  ;;  %v996_v9 = vld [vmem:[#allocation13 + $0x20] sm:$0xff]  ;;  %v998_v10 = vld [vmem:[#allocation13 + $0x28] sm:$0xff]  ;;  %s542_s22 = sshll.u32 %s1092_s8, 4  ;;  %s890_s8 = smov [#allocation16]   ;;  %s543_s22 = int_to_ptr.hbm [resolvable:$true] %s542_s22 }
  0x2e   :  { %182 = vmatpush.bf16.msra.mxu0 %v610_v6  ;;  %150 = vperm.xlu0 %645, %v968_v7   ;;  %v315_v1 = vmul.f32 %v311_v53, %v992_v62  ;;  %v317_v12 = vmul.f32 %v311_v53, %v998_v10  ;;  %v1004_v18 = vld [vmem:[#allocation13 + $0x38] sm:$0xff]  ;;  %s527_s2 = sshll.u32 %s890_s8, 4  ;;  %s529_s25 = sshll.u32 %s1091_s7, 4  ;;  %s528_s2 = int_to_ptr.vmem [resolvable:$true] %s527_s2  ;;  %s530_s25 = int_to_ptr.hbm [resolvable:$true] %s529_s25 }
  0x2f   :  { %270 = vmatpush.bf16.msra.mxu1 %v592_v21  ;;  %620 = vmatpush.bf16.msra.mxu3 %v592_v21  ;;  %v319_v21 = vmul.f32 %v311_v53, %v1004_v18 }
  0x30   :  { %624 = vmatpush.bf16.msra.mxu2 %v596_v23 }
  0x32   :  { %183 = vmatpush.bf16.msra.mxu0 %v609_v8  ;;  %s440_s16 = smul.f32 %s979_s5, %s131_s6 }
  0x33   :  { %271 = vmatpush.bf16.msra.mxu1 %v584_v27  ;;  %621 = vmatpush.bf16.msra.mxu3 %v584_v27 }
  0x34   :  { %625 = vmatpush.bf16.msra.mxu2 %v588_v31 }
  0x35   :  { %572 = vmatmul.msk.bf16.vlgmr.msra.gmra.mxu0 %vm168_vm1, %v137_v11  ;;  %v316_v11 = vmul.f32 %v311_v53, %v996_v9 }
  0x36   :  { %288 = vmatpush.bf16.msrb.mxu0 %v604_v17  ;;  %v1002_v17 = vld [vmem:[#allocation13 + $0x30] sm:$0xff] }
  0x37   :  { %272 = vmatpush.bf16.msra.mxu1 %v576_v34  ;;  %622 = vmatpush.bf16.msra.mxu3 %v576_v34  ;;  %v318_v20 = vmul.f32 %v311_v53, %v1002_v17 }
  0x38   :  { %626 = vmatpush.bf16.msra.mxu2 %v580_v35 }
  0x3a   :  { %289 = vmatpush.bf16.msrb.mxu0 %v596_v23 }
  0x3e   :  { %290 = vmatpush.bf16.msrb.mxu0 %v588_v31 }
  0x42   :  { %291 = vmatpush.bf16.msrb.mxu0 %v580_v35 }
  0x98   :  { %v146_v36 = vpop.permute.xlu0 %145 }
  0xa0   :  { %v151_v40 = vpop.permute.xlu0 %150 }
  0xb2   :  { %v185_v37 = vpop.f32.mrf.mxu0 }
  0xb3   :  { %v186_v38 = vadd.f32 %v185_v37, %v146_v36 }
  0xb5   :  { %v190_v39 = vmax.f32 %v186_v38, 0.0 }
  0xb7   :  { %193 = vst.msk [vmem:[#allocation2] sm:$0xff] %vm192_vm2, %v190_v39  ;;  %197 = vrot.lane.b32.xlu1 %v190_v39, %s879_s26 }
  0xba   :  { %v187_v41 = vpop.f32.mrf.mxu0 }
  0xbb   :  { %v188_v42 = vadd.f32 %v187_v41, %v151_v40 }
  0xbd   :  { %v191_v43 = vmax.f32 %v188_v42, 0.0 }
  0xbe   :  { %v205_v44 = vld [vmem:[#allocation2] sm:$0xff] }
  0xbf   :  { %194 = vst.msk [vmem:[#allocation2 + $0x8] sm:$0xff] %vm192_vm2, %v191_v43  ;;  %199 = vrot.lane.b32.xlu1 %v191_v43, %s879_s26 }
  0xc6   :  { %v206_v45 = vld [vmem:[#allocation2 + $0x8] sm:$0xff] }
  0xc7   :  { %v209_v46 = vpack.c.bf16 %v206_v45, %v205_v44 }
  0xc9   :  { %605 = vmatmul.msk.bf16.vlgmr.msra.gmra.mxu1 %vm192_vm2, %v209_v46  ;;  %607 = vmatmul.msk.bf16.vlgmr.msrb.gmra.mxu0 %vm192_vm2, %v209_v46 }
 0x129   :  { %v198_v47 = vpop.permute.xlu1 %197 }
 0x12a   :  { %203 = vst.msk [vmem:[#allocation2 + $0x10] sm:$0xff] %vm192_vm2, %v198_v47 }
 0x131   :  { %v200_v48 = vpop.permute.xlu1 %199  ;;  %v207_v49 = vld [vmem:[#allocation2 + $0x10] sm:$0xff] }
 0x132   :  { %204 = vst.msk [vmem:[#allocation2 + $0x18] sm:$0xff] %vm192_vm2, %v200_v48 }
 0x139   :  { %v208_v50 = vld [vmem:[#allocation2 + $0x18] sm:$0xff] }
 0x13a   :  { %v210_v51 = vpack.c.bf16 %v208_v50, %v207_v49 }
 0x13c   :  { %606 = vmatmul.msk.bf16.vlgmr.msra.gmra.mxu3 %vm192_vm2, %v210_v51  ;;  %608 = vmatmul.msk.bf16.vlgmr.msra.gmra.mxu2 %vm192_vm2, %v210_v51 }
 0x146   :  { %v274_v57 = vpop.f32.mrf.mxu1  ;;  %v293_v58 = vpop.f32.mrf.mxu0 }
 0x147   :  { %v320_v59 = vadd.f32 %v312_v55, %v274_v57  ;;  %v321_v60 = vadd.f32 %v313_v56, %v293_v58  ;;  %v887_v57 = vmov 2  }
 0x148   :  { %648 = vset.pattern.permute.xlu1 %v887_v57 }
 0x149   :  { %v328_v63 = vadd.f32 %v321_v60, %v320_v59 }
 0x14b   :  { %329 = vadd.xlane.f32.xlu2 %v328_v63 }
 0x14e   :  { %v276_v2 = vpop.f32.mrf.mxu1  ;;  %v295_v4 = vpop.f32.mrf.mxu0 }
 0x14f   :  { %v322_v5 = vadd.f32 %v314_v0, %v276_v2  ;;  %v323_v6 = vadd.f32 %v315_v1, %v295_v4 }
 0x151   :  { %v331_v8 = vadd.f32 %v323_v6, %v322_v5 }
 0x153   :  { %332 = vadd.xlane.f32.xlu2 %v331_v8 }
 0x1be   :  { %v330_v27 = vpop.xlane.xlu2 %329 }
 0x1bf   :  { %v279_v13 = vpop.f32.mrf.mxu3  ;;  %v298_v14 = vpop.f32.mrf.mxu2 }
 0x1c0   :  { %v324_v15 = vadd.f32 %v316_v11, %v279_v13  ;;  %v325_v16 = vadd.f32 %v317_v12, %v298_v14 }
 0x1c2   :  { %v334_v19 = vadd.f32 %v325_v16, %v324_v15 }
 0x1c4   :  { %335 = vadd.xlane.f32.xlu0 %v334_v19 }
 0x1c6   :  { %v333_v35 = vpop.xlane.xlu2 %332 }
 0x1c7   :  { %v281_v22 = vpop.f32.mrf.mxu3  ;;  %v300_v23 = vpop.f32.mrf.mxu2 }
 0x1c8   :  { %v326_v24 = vadd.f32 %v318_v20, %v281_v22  ;;  %v327_v25 = vadd.f32 %v319_v21, %v300_v23 }
 0x1ca   :  { %v337_v26 = vadd.f32 %v327_v25, %v326_v24 }
 0x1cc   :  { %338 = vadd.xlane.f32.xlu1 %v337_v26 }
 0x1e5   :  { %425 = vperm.xlu1 %648, %v965_v3  }
 0x237   :  { %v336_v28 = vpop.xlane.xlu0 %335 }
 0x238   :  { %v340_v29 = vadd.f32 %v336_v28, %v330_v27 }
 0x23a   :  { %v342_v30 = vmul.f32 0.001953125, %v340_v29 }
 0x23c   :  { %v1008_v31 = vsub.f32 %v320_v59, %v342_v30  ;;  %v1010_v32 = vsub.f32 %v321_v60, %v342_v30  ;;  %v1016_v39 = vsub.f32 %v324_v15, %v342_v30  ;;  %v1018_v40 = vsub.f32 %v325_v16, %v342_v30 }
 0x23d   :  { %v888_v59 = vmov 1   ;;  %v376_v60 = vmul.f32 0.0, %v342_v30 }
 0x23e   :  { %v352_v33 = vmul.f32 %v1008_v31, %v1008_v31  ;;  %v353_v34 = vmul.f32 %v1010_v32, %v1010_v32  ;;  %v356_v42 = vmul.f32 %v1016_v39, %v1016_v39  ;;  %v357_v43 = vmul.f32 %v1018_v40, %v1018_v40  ;;  %646 = vset.pattern.permute.xlu2 %v888_v59 }
 0x23f   :  { %v339_v36 = vpop.xlane.xlu1 %338  ;;  %647 = vset.pattern.permute.xlu0 %v888_v59  ;;  %v378_v1 = vmul.f32 %v376_v60, %v342_v30  ;;  %v491_v59 = vld [vmem:[#allocation14] sm:$0xff]  ;;  %v492_v60 = vld [vmem:[#allocation14 + $0x8] sm:$0xff] }
 0x240   :  { %v341_v37 = vadd.f32 %v339_v36, %v333_v35  ;;  %v360_v38 = vadd.f32 %v353_v34, %v352_v33  ;;  %v366_v44 = vadd.f32 %v357_v43, %v356_v42 }
 0x242   :  { %361 = vadd.xlane.f32.xlu2 %v360_v38  ;;  %v343_v41 = vmul.f32 0.001953125, %v341_v37 }
 0x244   :  { %v1024_v45 = vsub.f32 %v322_v5, %v343_v41  ;;  %v1026_v46 = vsub.f32 %v323_v6, %v343_v41  ;;  %v1032_v50 = vsub.f32 %v326_v24, %v343_v41  ;;  %v1034_v51 = vsub.f32 %v327_v25, %v343_v41 }
 0x245   :  { %v377_v11 = vmul.f32 0.0, %v343_v41 }
 0x246   :  { %v354_v47 = vmul.f32 %v1024_v45, %v1024_v45  ;;  %v355_v48 = vmul.f32 %v1026_v46, %v1026_v46  ;;  %v358_v53 = vmul.f32 %v1032_v50, %v1032_v50  ;;  %v359_v55 = vmul.f32 %v1034_v51, %v1034_v51 }
 0x247   :  { %v379_v16 = vmul.f32 %v377_v11, %v343_v41 }
 0x248   :  { %v363_v49 = vadd.f32 %v355_v48, %v354_v47  ;;  %v369_v56 = vadd.f32 %v359_v55, %v358_v53  ;;  %v450_v53 = vstv %s131_s6 }
 0x24a   :  { %367 = vadd.xlane.f32.xlu2 %v366_v44 }
 0x252   :  { %364 = vadd.xlane.f32.xlu2 %v363_v49 }
 0x257   :  { %v426_v41 = vpop.permute.xlu1 %425 }
 0x25a   :  { %370 = vadd.xlane.f32.xlu2 %v369_v56 }
 0x2b5   :  { %v362_v58 = vpop.xlane.xlu2 %361 }
 0x2bd   :  { %v368_v63 = vpop.xlane.xlu2 %367 }
 0x2be   :  { %v372_v0 = vadd.f32 %v368_v63, %v362_v58 }
 0x2c0   :  { %v374_v2 = vmul.f32 0.001953125, %v372_v0 }
 0x2c2   :  { %v380_v4 = vsub.f32 %v374_v2, %v378_v1  ;;  %v496_v1 = vld [vmem:[#allocation14 + $0x28] sm:$0xff] }
 0x2c4   :  { %v382_v5 = vadd.f32 1e-05, %v380_v4 }
 0x2c5   :  { %v365_v6 = vpop.xlane.xlu2 %364 }
 0x2c6   :  { %651 = vrsqrt.f32 %v382_v5  ;;  %vm390_vm4 = vweird.f32 %v382_v5 }
 0x2cc   :  { %v652_v8 = vpop.eup %651 }
 0x2cd   :  { %v385_v12 = vmul.f32 %v652_v8, %v382_v5  ;;  %v371_v13 = vpop.xlane.xlu2 %370  ;;  %vm391_vm3 = vweird.f32 %v652_v8 }
 0x2ce   :  { %v373_v14 = vadd.f32 %v371_v13, %v365_v6  ;;  %vm392_vm5 = vmor %vm390_vm4, %vm391_vm3  ;;  %v499_v6 = vmul.f32 0.5, %v491_v59 }
 0x2cf   :  { %v386_v15 = vmul.f32 %v652_v8, %v385_v12 }
 0x2d0   :  { %v375_v19 = vmul.f32 0.001953125, %v373_v14 }
 0x2d1   :  { %v387_v20 = vmul.f32 0.5, %v386_v15 }
 0x2d2   :  { %v381_v21 = vsub.f32 %v375_v19, %v379_v16  ;;  %v504_v16 = vmul.f32 0.5, %v496_v1 }
 0x2d3   :  { %v388_v22 = vsub.f32 1.5, %v387_v20 }
 0x2d4   :  { %v383_v23 = vadd.f32 1e-05, %v381_v21 }
 0x2d5   :  { %v389_v24 = vmul.f32 %v652_v8, %v388_v22 }
 0x2d6   :  { %653 = vrsqrt.f32 %v383_v23  ;;  %vm400_vm7 = vweird.f32 %v383_v23 }
 0x2d7   :  { %v393_v25 = vsel %vm392_vm5, %v652_v8, %v389_v24  ;;  %v500_v8 = vmul.f32 0.5, %v492_v60 }
 0x2d8   :  { %v404_v26 = vmul.f32 %v393_v25, %v965_v3  ;;  %v441_v3 = vstv %s440_s16 }
 0x2d9   :  { %v442_v37 = vmul.f32 %v441_v3, %v983_v52  ;;  %v443_v48 = vmul.f32 %v441_v3, %v986_v54  ;;  %v447_v49 = vmul.f32 %v441_v3, %v998_v10 }
 0x2da   :  { %408 = vperm.xlu2 %646, %v404_v26  }
 0x2dc   :  { %v654_v27 = vpop.eup %653 }
 0x2dd   :  { %v395_v28 = vmul.f32 %v654_v27, %v383_v23  ;;  %vm401_vm6 = vweird.f32 %v654_v27 }
 0x2de   :  { %vm402_vm8 = vmor %vm400_vm7, %vm401_vm6 }
 0x2df   :  { %v396_v29 = vmul.f32 %v654_v27, %v395_v28 }
 0x2e1   :  { %v397_v30 = vmul.f32 0.5, %v396_v29 }
 0x2e2   :  { %649 = vset.pattern.permute.xlu2 %v887_v57 }
 0x2e3   :  { %v398_v33 = vsub.f32 1.5, %v397_v30  ;;  %429 = vperm.xlu2 %649, %v968_v7   ;;  %v445_v30 = vmul.f32 %v441_v3, %v992_v62 }
 0x2e5   :  { %v399_v34 = vmul.f32 %v654_v27, %v398_v33  ;;  %v448_v33 = vmul.f32 %v441_v3, %v1002_v17 }
 0x2e7   :  { %v403_v35 = vsel %vm402_vm8, %v654_v27, %v399_v34  ;;  %v449_v34 = vmul.f32 %v441_v3, %v1004_v18 }
 0x2e8   :  { %v405_v36 = vmul.f32 %v403_v35, %v968_v7  ;;  %v446_v7 = vmul.f32 %v441_v3, %v996_v9 }
 0x2ea   :  { %413 = vperm.xlu0 %647, %v405_v36  }
 0x2f2   :  { %650 = vset.pattern.permute.xlu0 %v887_v57 }
 0x334   :  { %v409_v38 = vpop.permute.xlu2 %408 }
 0x335   :  { %v416_v42 = vmul.f32 %v409_v38, %v1008_v31  ;;  %v417_v43 = vmul.f32 %v409_v38, %v1010_v32  ;;  %v420_v44 = vmul.f32 %v409_v38, %v1016_v39  ;;  %v421_v47 = vmul.f32 %v409_v38, %v1018_v40  ;;  %v495_v31 = vld [vmem:[#allocation14 + $0x20] sm:$0xff] }
 0x336   :  { %v503_v11 = vmul.f32 0.5, %v495_v31 }
 0x337   :  { %v432_v55 = vadd.f32 %v426_v41, %v416_v42  ;;  %v433_v56 = vadd.f32 %v426_v41, %v417_v43  ;;  %v436_v57 = vadd.f32 %v426_v41, %v420_v44  ;;  %v437_v58 = vadd.f32 %v426_v41, %v421_v47  ;;  %v493_v41 = vld [vmem:[#allocation14 + $0x10] sm:$0xff] }
 0x338   :  { %v497_v42 = vld [vmem:[#allocation14 + $0x30] sm:$0xff] }
 0x339   :  { %v451_v63 = vmul.f32 %v450_v53, %v432_v55  ;;  %v452_v32 = vmul.f32 %v450_v53, %v433_v56  ;;  %v455_v0 = vmul.f32 %v450_v53, %v436_v57  ;;  %v456_v39 = vmul.f32 %v450_v53, %v437_v58 }
 0x33a   :  { %v505_v56 = vmul.f32 0.5, %v497_v42 }
 0x33b   :  { %v459_v40 = vadd.f32 %v451_v63, %v442_v37  ;;  %v460_v2 = vadd.f32 %v452_v32, %v443_v48  ;;  %v463_v4 = vadd.f32 %v455_v0, %v446_v7  ;;  %v464_v5 = vadd.f32 %v456_v39, %v447_v49 }
 0x33d   :  { %467 = vst [vmem:[#allocation17] sm:$0xff] %v459_v40  ;;  %v475_v12 = vmul.f32 1.5, %v459_v40  ;;  %v476_v13 = vmul.f32 1.5, %v460_v2  ;;  %v479_v14 = vmul.f32 1.5, %v463_v4  ;;  %v480_v15 = vmul.f32 1.5, %v464_v5  ;;  %v430_v28 = vpop.permute.xlu2 %429 }
 0x33e   :  { %468 = vst [vmem:[#allocation17 + $0x8] sm:$0xff] %v460_v2 }
 0x33f   :  { %471 = vst [vmem:[#allocation17 + $0x20] sm:$0xff] %v463_v4  ;;  %v483_v19 = vsub.f32 %v983_v52, %v475_v12  ;;  %v484_v20 = vsub.f32 %v986_v54, %v476_v13  ;;  %v487_v21 = vsub.f32 %v996_v9, %v479_v14  ;;  %v488_v22 = vsub.f32 %v998_v10, %v480_v15 }
 0x340   :  { %472 = vst [vmem:[#allocation17 + $0x28] sm:$0xff] %v464_v5  ;;  %v444_v10 = vmul.f32 %v441_v3, %v990_v61  ;;  %v501_v3 = vmul.f32 0.5, %v493_v41 }
 0x341   :  { %v507_v23 = vadd.f32 %v499_v6, %v483_v19  ;;  %v508_v24 = vadd.f32 %v500_v8, %v484_v20  ;;  %v511_v25 = vadd.f32 %v503_v11, %v487_v21  ;;  %v512_v26 = vadd.f32 %v504_v16, %v488_v22 }
 0x343   :  { %515 = vst [vmem:[#allocation16] sm:$0xff] %v507_v23 }
 0x344   :  { %516 = vst [vmem:[#allocation16 + $0x8] sm:$0xff] %v508_v24 }
 0x345   :  { %519 = vst [vmem:[#allocation16 + $0x20] sm:$0xff] %v511_v25 }
 0x346   :  { %520 = vst [vmem:[#allocation16 + $0x28] sm:$0xff] %v512_v26 }
 0x35c   :  { %v414_v27 = vpop.permute.xlu0 %413 }
 0x35d   :  { %v418_v29 = vmul.f32 %v414_v27, %v1024_v45  ;;  %v419_v52 = vmul.f32 %v414_v27, %v1026_v46  ;;  %v422_v54 = vmul.f32 %v414_v27, %v1032_v50  ;;  %v423_v9 = vmul.f32 %v414_v27, %v1034_v51  ;;  %v494_v45 = vld [vmem:[#allocation14 + $0x18] sm:$0xff] }
 0x35e   :  { %v498_v51 = vld [vmem:[#allocation14 + $0x38] sm:$0xff]  ;;  %v502_v55 = vmul.f32 0.5, %v494_v45 }
 0x35f   :  { %v434_v35 = vadd.f32 %v430_v28, %v418_v29  ;;  %v435_v36 = vadd.f32 %v430_v28, %v419_v52  ;;  %v438_v37 = vadd.f32 %v430_v28, %v422_v54  ;;  %v439_v38 = vadd.f32 %v430_v28, %v423_v9 }
 0x360   :  { %v506_v60 = vmul.f32 0.5, %v498_v51 }
 0x361   :  { %v453_v46 = vmul.f32 %v450_v53, %v434_v35  ;;  %v454_v43 = vmul.f32 %v450_v53, %v435_v36  ;;  %v457_v50 = vmul.f32 %v450_v53, %v438_v37  ;;  %v458_v44 = vmul.f32 %v450_v53, %v439_v38 }
 0x363   :  { %v461_v47 = vadd.f32 %v453_v46, %v444_v10  ;;  %v462_v48 = vadd.f32 %v454_v43, %v445_v30  ;;  %v465_v7 = vadd.f32 %v457_v50, %v448_v33  ;;  %v466_v49 = vadd.f32 %v458_v44, %v449_v34 }
 0x365   :  { %469 = vst [vmem:[#allocation17 + $0x10] sm:$0xff] %v461_v47  ;;  %v477_v57 = vmul.f32 1.5, %v461_v47  ;;  %v478_v58 = vmul.f32 1.5, %v462_v48  ;;  %v481_v53 = vmul.f32 1.5, %v465_v7  ;;  %v482_v59 = vmul.f32 1.5, %v466_v49 }
 0x366   :  { %470 = vst [vmem:[#allocation17 + $0x18] sm:$0xff] %v462_v48 }
 0x367   :  { %473 = vst [vmem:[#allocation17 + $0x30] sm:$0xff] %v465_v7  ;;  %v485_v31 = vsub.f32 %v990_v61, %v477_v57  ;;  %v486_v63 = vsub.f32 %v992_v62, %v478_v58  ;;  %v489_v32 = vsub.f32 %v1002_v17, %v481_v53  ;;  %v490_v0 = vsub.f32 %v1004_v18, %v482_v59 }
 0x368   :  { %474 = vst [vmem:[#allocation17 + $0x38] sm:$0xff] %v466_v49 }
 0x369   :  { %v509_v39 = vadd.f32 %v501_v3, %v485_v31  ;;  %v510_v1 = vadd.f32 %v502_v55, %v486_v63  ;;  %v513_v40 = vadd.f32 %v505_v56, %v489_v32  ;;  %548 = dma.vmem_to_hbm [thread:$0]  %s541_s19, 1024, %s543_s22, [#allocation18], %s883_s0, %s883_s0, %s884_s14   ;;  %v514_v61 = vadd.f32 %v506_v60, %v490_v0 }
 0x36b   :  { %517 = vst [vmem:[#allocation16 + $0x10] sm:$0xff] %v509_v39 }
 0x36c   :  { %518 = vst [vmem:[#allocation16 + $0x18] sm:$0xff] %v510_v1 }
 0x36d   :  { %521 = vst [vmem:[#allocation16 + $0x30] sm:$0xff] %v513_v40 }
 0x36e   :  { %522 = vst [vmem:[#allocation16 + $0x38] sm:$0xff] %v514_v61 }
 0x36f   :  { %535 = dma.vmem_to_hbm [thread:$0]  %s528_s2, 1024, %s530_s25, [#allocation7], %s883_s0, %s883_s0, %s884_s14  }
 0x370   :  { %869 = dma.done.wait [#allocation7], 1024  }
 0x371   :  { %870 = vsyncadd [#allocation7], 4294966272 }
 0x372   :  { %871 = dma.done.wait [#allocation18], 1024  }
 0x373   :  { %872 = vsyncadd [#allocation18], 4294966272 }
 0x374   :  { %557 = vsyncpa [#allocation6], 1 }
 0x375   :  { %558 = vsyncpa [#allocation9], 1 }
 0x376   :  { %559 = vsyncpa [#allocation12], 1 }
 0x377   :  { %560 = vsyncpa [#allocation15], 1 }
 0x378   :  { %561 = vsyncpa [#allocation7], 1 }
 0x379   :  { %562 = vsyncpa [#allocation18], 1 }

// kernel: tpu_custom_call.1
= control target key start
LH: loop header
LB: loop body
LE: loop exit
PB: predicated region body
PF: predicated region fallthrough
CT: control target
= control target key end

     0   :  { %s873_s30 = smov [#allocation4]   ;;  %s1084_s0 = inlined_call_operand.hbm [shape: f32[2], index: 0, kind: input, shape index: {}]   ;;  %s1085_s1 = inlined_call_operand.hbm [shape: bf16[36,128], index: 1, kind: input, shape index: {}]   ;;  %s1086_s2 = inlined_call_operand.hbm [shape: f32[16,36], index: 2, kind: input, shape index: {}]   ;;  %s1087_s3 = inlined_call_operand.hbm [shape: bf16[64,256], index: 3, kind: input, shape index: {}]   ;;  %s1088_s4 = inlined_call_operand.hbm [shape: f32[16,128], index: 4, kind: input, shape index: {}]   ;;  %s1089_s5 = inlined_call_operand.hbm [shape: f32[2,16,256], index: 5, kind: input, shape index: {}]   ;;  %s1090_s6 = inlined_call_operand.hbm [shape: f32[2,16,256], index: 6, kind: input, shape index: {}]   ;;  %s1091_s7 = inlined_call_operand.hbm [shape: f32[2,16,256], index: 7, kind: output, shape index: {0}]   ;;  %s1092_s8 = inlined_call_operand.hbm [shape: f32[2,16,256], index: 8, kind: output, shape index: {1}]  }
   0x1   :  { %s15_s29 = sshll.u32 %s1084_s0, 4  ;;  %s16_s29 = int_to_ptr.hbm [resolvable:$true] %s15_s29 }
   0x2   :  { %18 = dma.hbm_to_smem %s16_s29, 16, %s873_s30, [#allocation3] }
   0x3   :  { %859 = dma.done.wait [#allocation3], 16 }
   0x4   :  { %860 = vsyncadd [#allocation3], 4294967280 }
   0x5   :  { %21 = sfence }
   0x6   :  { %22 = vsyncpa [#allocation6], 0 }
   0x7   :  { %23 = vsyncpa [#allocation9], 0 }
   0x8   :  { %24 = vsyncpa [#allocation12], 0 }
   0x9   :  { %25 = vsyncpa [#allocation15], 0 }
   0xa   :  { %26 = vsyncpa [#allocation7], 0  ;;  %s45_s11 = sshll.u32 %s1086_s2, 4  ;;  %s46_s11 = int_to_ptr.hbm [resolvable:$true] %s45_s11 }
   0xb   :  { %27 = vsyncpa [#allocation18], 0  ;;  %s874_s12 = smov [#allocation8]   ;;  %s71_s15 = sshll.u32 %s1088_s4, 4  ;;  %s72_s15 = int_to_ptr.hbm [resolvable:$true] %s71_s15 }
   0xc   :  { %s47_s13 = sshll.u32 %s874_s12, 4  ;;  %s875_s16 = smov 128   ;;  %s48_s13 = int_to_ptr.vmem [resolvable:$true] %s47_s13 }
   0xd   :  { %s876_s17 = smov 8   ;;  %s877_s18 = smov [#allocation11]  }
   0xe   :  { %53 = dma.hbm_to_vmem [thread:$0]  %s46_s11, 256, %s48_s13, [#allocation9], %s875_s16, %s875_s16, %s876_s17  }
   0xf   :  { %s73_s19 = sshll.u32 %s877_s18, 4  ;;  %s32_s22 = sshll.u32 %s1085_s1, 4  ;;  %s74_s19 = int_to_ptr.vmem [resolvable:$true] %s73_s19  ;;  %s33_s22 = int_to_ptr.hbm [resolvable:$true] %s32_s22 }
  0x10   :  { %79 = dma.hbm_to_vmem [thread:$0]  %s72_s15, 256, %s74_s19, [#allocation12], %s875_s16, %s875_s16, %s876_s17  }
  0x11   :  { %s878_s2 = smov [#allocation5]   ;;  %s58_s4 = sshll.u32 %s1087_s3, 4  ;;  %s59_s4 = int_to_ptr.hbm [resolvable:$true] %s58_s4 }
  0x12   :  { %s34_s23 = sshll.u32 %s878_s2, 4  ;;  %s879_s26 = smov 64   ;;  %s35_s23 = int_to_ptr.vmem [resolvable:$true] %s34_s23 }
  0x13   :  { %s880_s27 = smov 4   ;;  %s881_s28 = smov [#allocation10]  }
  0x14   :  { %40 = dma.hbm_to_vmem [thread:$0]  %s33_s22, 320, %s35_s23, [#allocation6], %s879_s26, %s879_s26, %s880_s27  }
  0x15   :  { %s60_s29 = sshll.u32 %s881_s28, 4  ;;  %s84_s9 = sshll.u32 %s1089_s5, 4  ;;  %s61_s29 = int_to_ptr.vmem [resolvable:$true] %s60_s29  ;;  %s85_s9 = int_to_ptr.hbm [resolvable:$true] %s84_s9 }
  0x16   :  { %66 = dma.hbm_to_vmem [thread:$0]  %s59_s4, 1024, %s61_s29, [#allocation9], %s875_s16, %s875_s16, %s876_s17  }
  0x17   :  { %s882_s10 = smov [#allocation13]   ;;  %s97_s13 = sshll.u32 %s1090_s6, 4  ;;  %s98_s13 = int_to_ptr.hbm [resolvable:$true] %s97_s13 }
  0x18   :  { %s86_s11 = sshll.u32 %s882_s10, 4  ;;  %s883_s0 = smov 256   ;;  %s87_s11 = int_to_ptr.vmem [resolvable:$true] %s86_s11 }
  0x19   :  { %s884_s14 = smov 16   ;;  %s885_s15 = smov [#allocation14]  }
  0x1a   :  { %92 = dma.hbm_to_vmem [thread:$0]  %s85_s9, 1024, %s87_s11, [#allocation12], %s883_s0, %s883_s0, %s884_s14  }
  0x1b   :  { %s99_s18 = sshll.u32 %s885_s15, 4  ;;  %s100_s18 = int_to_ptr.vmem [resolvable:$true] %s99_s18 }
  0x1c   :  { %105 = dma.hbm_to_vmem [thread:$0]  %s98_s13, 1024, %s100_s18, [#allocation15], %s883_s0, %s883_s0, %s884_s14  }
  0x1d   :  { %861 = dma.done.wait [#allocation6], 320  }
  0x1e   :  { %862 = vsyncadd [#allocation6], 4294966976 }
  0x1f   :  { %863 = dma.done.wait [#allocation9], 1280  }
  0x20   :  { %864 = vsyncadd [#allocation9], 4294966016 }
  0x21   :  { %865 = dma.done.wait [#allocation12], 1280  }
  0x22   :  { %866 = vsyncadd [#allocation12], 4294966016 }
  0x23   :  { %867 = dma.done.wait [#allocation15], 1024  }
  0x24   :  { %868 = vsyncadd [#allocation15], 4294966272  ;;  %v886_v0 = vmov 0   ;;  %v142_v1 = vld [vmem:[#allocation5 + $0x10] sm:$0x3]  ;;  %v965_v3 = vld [vmem:[#allocation11] sm:$0xff] }
  0x25   :  { %645 = vset.pattern.permute.xlu0 %v886_v0  ;;  %v162_v2 = vunpack.c.l.b16 %v142_v1  ;;  %vm172_vm0 = vcmask 1041408   ;;  %v610_v6 = vld [vmem:[#allocation5 + $0x8] sm:$0xff]  ;;  %v609_v8 = vld [vmem:[#allocation5] sm:$0xff]  ;;  %v135_v9 = vld [vmem:[#allocation8] sm:$0xff]  ;;  %vm168_vm1 = vcmask 293888   ;;  %vm192_vm2 = vcmask 523264  }
  0x26   :  { %145 = vperm.xlu0 %645, %v965_v3   ;;  %v968_v7 = vld [vmem:[#allocation11 + $0x8] sm:$0xff]  ;;  %v136_v10 = vld [vmem:[#allocation8 + $0x8] sm:$0xff]  ;;  %v599_v12 = vld [vmem:[#allocation10 + $0x30] sm:$0xf]  ;;  %s979_s5 = sld [smem:[#allocation4 + $0x1]]  ;;  %s889_s17 = smov [#allocation17]  }
  0x27   :  { %v165_v4 = vpack.c.b16 %v162_v2, %v162_v2  ;;  %v137_v11 = vpack.c.bf16 %v136_v10, %v135_v9  ;;  %v618_v13 = vld [vmem:[#allocation10 + $0x34] sm:$0xf0]  ;;  %v617_v14 = vld [vmem:[#allocation10 + $0x34] sm:$0xf]  ;;  %v601_v16 = vld [vmem:[#allocation10 + $0x38] sm:$0xf0] }
  0x28   :  { %v600_v15 = vor.u32 %v618_v13, %v599_v12  ;;  %v604_v17 = vor.u32 %v617_v14, %v601_v16  ;;  %v591_v18 = vld [vmem:[#allocation10 + $0x20] sm:$0xf]  ;;  %v616_v19 = vld [vmem:[#allocation10 + $0x24] sm:$0xf0]  ;;  %v615_v20 = vld [vmem:[#allocation10 + $0x24] sm:$0xf] }
  0x29   :  { %v174_v5 = vsel %vm172_vm0, %v165_v4, 0  ;;  %v592_v21 = vor.u32 %v616_v19, %v591_v18  ;;  %v593_v22 = vld [vmem:[#allocation10 + $0x28] sm:$0xf0]  ;;  %v583_v24 = vld [vmem:[#allocation10 + $0x10] sm:$0xf]  ;;  %v986_v54 = vld [vmem:[#allocation13 + $0x8] sm:$0xff] }
  0x2a   :  { %181 = vmatpush.bf16.msra.mxu0 %v174_v5  ;;  %269 = vmatpush.bf16.msra.mxu1 %v600_v15  ;;  %v596_v23 = vor.u32 %v615_v20, %v593_v22  ;;  %v614_v25 = vld [vmem:[#allocation10 + $0x14] sm:$0xf0]  ;;  %v613_v26 = vld [vmem:[#allocation10 + $0x14] sm:$0xf]  ;;  %v585_v28 = vld [vmem:[#allocation10 + $0x18] sm:$0xf0] }
  0x2b   :  { %619 = vmatpush.bf16.msra.mxu3 %v600_v15  ;;  %623 = vmatpush.bf16.msra.mxu2 %v604_v17  ;;  %v584_v27 = vor.u32 %v614_v25, %v583_v24  ;;  %v575_v29 = vld [vmem:[#allocation10] sm:$0xf]  ;;  %v612_v30 = vld [vmem:[#allocation10 + $0x4] sm:$0xf0]  ;;  %v588_v31 = vor.u32 %v613_v26, %v585_v28  ;;  %v611_v32 = vld [vmem:[#allocation10 + $0x4] sm:$0xf] }
  0x2c   :  { %v577_v33 = vld [vmem:[#allocation10 + $0x8] sm:$0xf0]  ;;  %v576_v34 = vor.u32 %v612_v30, %v575_v29  ;;  %v983_v52 = vld [vmem:[#allocation13] sm:$0xff]  ;;  %v311_v53 = vstv %s979_s5  ;;  %v990_v61 = vld [vmem:[#allocation13 + $0x10] sm:$0xff]  ;;  %s131_s6 = sld [smem:[#allocation4]]  ;;  %s1065_s19 = sshll.u32 %s889_s17, 4  ;;  %s541_s19 = int_to_ptr.vmem [resolvable:$true] %s1065_s19 }
  0x2d   :  { %v580_v35 = vor.u32 %v611_v32, %v577_v33  ;;  %v312_v55 = vmul.f32 %v311_v53, %v983_v52  ;;  %v313_v56 = vmul.f32 %v311_v53, %v986_v54  ;;  %v992_v62 = vld [vmem:[#allocation13 + $0x18] sm:$0xff]  ;;  %v314_v0 = vmul.f32 %v311_v53, %v990_v61  ;;  %v996_v9 = vld [vmem:[#allocation13 + $0x20] sm:$0xff]  ;;  %v998_v10 = vld [vmem:[#allocation13 + $0x28] sm:$0xff]  ;;  %s542_s22 = sshll.u32 %s1092_s8, 4  ;;  %s890_s8 = smov [#allocation16]   ;;  %s543_s22 = int_to_ptr.hbm [resolvable:$true] %s542_s22 }
  0x2e   :  { %182 = vmatpush.bf16.msra.mxu0 %v610_v6  ;;  %150 = vperm.xlu0 %645, %v968_v7   ;;  %v315_v1 = vmul.f32 %v311_v53, %v992_v62  ;;  %v317_v12 = vmul.f32 %v311_v53, %v998_v10  ;;  %v1004_v18 = vld [vmem:[#allocation13 + $0x38] sm:$0xff]  ;;  %s527_s2 = sshll.u32 %s890_s8, 4  ;;  %s529_s25 = sshll.u32 %s1091_s7, 4  ;;  %s528_s2 = int_to_ptr.vmem [resolvable:$true] %s527_s2  ;;  %s530_s25 = int_to_ptr.hbm [resolvable:$true] %s529_s25 }
  0x2f   :  { %270 = vmatpush.bf16.msra.mxu1 %v592_v21  ;;  %620 = vmatpush.bf16.msra.mxu3 %v592_v21  ;;  %v319_v21 = vmul.f32 %v311_v53, %v1004_v18 }
  0x30   :  { %624 = vmatpush.bf16.msra.mxu2 %v596_v23 }
  0x32   :  { %183 = vmatpush.bf16.msra.mxu0 %v609_v8  ;;  %s440_s16 = smul.f32 %s979_s5, %s131_s6 }
  0x33   :  { %271 = vmatpush.bf16.msra.mxu1 %v584_v27  ;;  %621 = vmatpush.bf16.msra.mxu3 %v584_v27 }
  0x34   :  { %625 = vmatpush.bf16.msra.mxu2 %v588_v31 }
  0x35   :  { %572 = vmatmul.msk.bf16.vlgmr.msra.gmra.mxu0 %vm168_vm1, %v137_v11  ;;  %v316_v11 = vmul.f32 %v311_v53, %v996_v9 }
  0x36   :  { %288 = vmatpush.bf16.msrb.mxu0 %v604_v17  ;;  %v1002_v17 = vld [vmem:[#allocation13 + $0x30] sm:$0xff] }
  0x37   :  { %272 = vmatpush.bf16.msra.mxu1 %v576_v34  ;;  %622 = vmatpush.bf16.msra.mxu3 %v576_v34  ;;  %v318_v20 = vmul.f32 %v311_v53, %v1002_v17 }
  0x38   :  { %626 = vmatpush.bf16.msra.mxu2 %v580_v35 }
  0x3a   :  { %289 = vmatpush.bf16.msrb.mxu0 %v596_v23 }
  0x3e   :  { %290 = vmatpush.bf16.msrb.mxu0 %v588_v31 }
  0x42   :  { %291 = vmatpush.bf16.msrb.mxu0 %v580_v35 }
  0x98   :  { %v146_v36 = vpop.permute.xlu0 %145 }
  0xa0   :  { %v151_v40 = vpop.permute.xlu0 %150 }
  0xb2   :  { %v185_v37 = vpop.f32.mrf.mxu0 }
  0xb3   :  { %v186_v38 = vadd.f32 %v185_v37, %v146_v36 }
  0xb5   :  { %v190_v39 = vmax.f32 %v186_v38, 0.0 }
  0xb7   :  { %193 = vst.msk [vmem:[#allocation2] sm:$0xff] %vm192_vm2, %v190_v39  ;;  %197 = vrot.lane.b32.xlu1 %v190_v39, %s879_s26 }
  0xba   :  { %v187_v41 = vpop.f32.mrf.mxu0 }
  0xbb   :  { %v188_v42 = vadd.f32 %v187_v41, %v151_v40 }
  0xbd   :  { %v191_v43 = vmax.f32 %v188_v42, 0.0 }
  0xbe   :  { %v205_v44 = vld [vmem:[#allocation2] sm:$0xff] }
  0xbf   :  { %194 = vst.msk [vmem:[#allocation2 + $0x8] sm:$0xff] %vm192_vm2, %v191_v43  ;;  %199 = vrot.lane.b32.xlu1 %v191_v43, %s879_s26 }
  0xc6   :  { %v206_v45 = vld [vmem:[#allocation2 + $0x8] sm:$0xff] }
  0xc7   :  { %v209_v46 = vpack.c.bf16 %v206_v45, %v205_v44 }
  0xc9   :  { %605 = vmatmul.msk.bf16.vlgmr.msra.gmra.mxu1 %vm192_vm2, %v209_v46  ;;  %607 = vmatmul.msk.bf16.vlgmr.msrb.gmra.mxu0 %vm192_vm2, %v209_v46 }
 0x129   :  { %v198_v47 = vpop.permute.xlu1 %197 }
 0x12a   :  { %203 = vst.msk [vmem:[#allocation2 + $0x10] sm:$0xff] %vm192_vm2, %v198_v47 }
 0x131   :  { %v200_v48 = vpop.permute.xlu1 %199  ;;  %v207_v49 = vld [vmem:[#allocation2 + $0x10] sm:$0xff] }
 0x132   :  { %204 = vst.msk [vmem:[#allocation2 + $0x18] sm:$0xff] %vm192_vm2, %v200_v48 }
 0x139   :  { %v208_v50 = vld [vmem:[#allocation2 + $0x18] sm:$0xff] }
 0x13a   :  { %v210_v51 = vpack.c.bf16 %v208_v50, %v207_v49 }
 0x13c   :  { %606 = vmatmul.msk.bf16.vlgmr.msra.gmra.mxu3 %vm192_vm2, %v210_v51  ;;  %608 = vmatmul.msk.bf16.vlgmr.msra.gmra.mxu2 %vm192_vm2, %v210_v51 }
 0x146   :  { %v274_v57 = vpop.f32.mrf.mxu1  ;;  %v293_v58 = vpop.f32.mrf.mxu0 }
 0x147   :  { %v320_v59 = vadd.f32 %v312_v55, %v274_v57  ;;  %v321_v60 = vadd.f32 %v313_v56, %v293_v58  ;;  %v887_v57 = vmov 2  }
 0x148   :  { %648 = vset.pattern.permute.xlu1 %v887_v57 }
 0x149   :  { %v328_v63 = vadd.f32 %v321_v60, %v320_v59 }
 0x14b   :  { %329 = vadd.xlane.f32.xlu2 %v328_v63 }
 0x14e   :  { %v276_v2 = vpop.f32.mrf.mxu1  ;;  %v295_v4 = vpop.f32.mrf.mxu0 }
 0x14f   :  { %v322_v5 = vadd.f32 %v314_v0, %v276_v2  ;;  %v323_v6 = vadd.f32 %v315_v1, %v295_v4 }
 0x151   :  { %v331_v8 = vadd.f32 %v323_v6, %v322_v5 }
 0x153   :  { %332 = vadd.xlane.f32.xlu2 %v331_v8 }
 0x1be   :  { %v330_v27 = vpop.xlane.xlu2 %329 }
 0x1bf   :  { %v279_v13 = vpop.f32.mrf.mxu3  ;;  %v298_v14 = vpop.f32.mrf.mxu2 }
 0x1c0   :  { %v324_v15 = vadd.f32 %v316_v11, %v279_v13  ;;  %v325_v16 = vadd.f32 %v317_v12, %v298_v14 }
 0x1c2   :  { %v334_v19 = vadd.f32 %v325_v16, %v324_v15 }
 0x1c4   :  { %335 = vadd.xlane.f32.xlu0 %v334_v19 }
 0x1c6   :  { %v333_v35 = vpop.xlane.xlu2 %332 }
 0x1c7   :  { %v281_v22 = vpop.f32.mrf.mxu3  ;;  %v300_v23 = vpop.f32.mrf.mxu2 }
 0x1c8   :  { %v326_v24 = vadd.f32 %v318_v20, %v281_v22  ;;  %v327_v25 = vadd.f32 %v319_v21, %v300_v23 }
 0x1ca   :  { %v337_v26 = vadd.f32 %v327_v25, %v326_v24 }
 0x1cc   :  { %338 = vadd.xlane.f32.xlu1 %v337_v26 }
 0x1e5   :  { %425 = vperm.xlu1 %648, %v965_v3  }
 0x237   :  { %v336_v28 = vpop.xlane.xlu0 %335 }
 0x238   :  { %v340_v29 = vadd.f32 %v336_v28, %v330_v27 }
 0x23a   :  { %v342_v30 = vmul.f32 0.001953125, %v340_v29 }
 0x23c   :  { %v1008_v31 = vsub.f32 %v320_v59, %v342_v30  ;;  %v1010_v32 = vsub.f32 %v321_v60, %v342_v30  ;;  %v1016_v39 = vsub.f32 %v324_v15, %v342_v30  ;;  %v1018_v40 = vsub.f32 %v325_v16, %v342_v30 }
 0x23d   :  { %v888_v59 = vmov 1   ;;  %v376_v60 = vmul.f32 0.0, %v342_v30 }
 0x23e   :  { %v352_v33 = vmul.f32 %v1008_v31, %v1008_v31  ;;  %v353_v34 = vmul.f32 %v1010_v32, %v1010_v32  ;;  %v356_v42 = vmul.f32 %v1016_v39, %v1016_v39  ;;  %v357_v43 = vmul.f32 %v1018_v40, %v1018_v40  ;;  %646 = vset.pattern.permute.xlu2 %v888_v59 }
 0x23f   :  { %v339_v36 = vpop.xlane.xlu1 %338  ;;  %647 = vset.pattern.permute.xlu0 %v888_v59  ;;  %v378_v1 = vmul.f32 %v376_v60, %v342_v30  ;;  %v491_v59 = vld [vmem:[#allocation14] sm:$0xff]  ;;  %v492_v60 = vld [vmem:[#allocation14 + $0x8] sm:$0xff] }
 0x240   :  { %v341_v37 = vadd.f32 %v339_v36, %v333_v35  ;;  %v360_v38 = vadd.f32 %v353_v34, %v352_v33  ;;  %v366_v44 = vadd.f32 %v357_v43, %v356_v42 }
 0x242   :  { %361 = vadd.xlane.f32.xlu2 %v360_v38  ;;  %v343_v41 = vmul.f32 0.001953125, %v341_v37 }
 0x244   :  { %v1024_v45 = vsub.f32 %v322_v5, %v343_v41  ;;  %v1026_v46 = vsub.f32 %v323_v6, %v343_v41  ;;  %v1032_v50 = vsub.f32 %v326_v24, %v343_v41  ;;  %v1034_v51 = vsub.f32 %v327_v25, %v343_v41 }
 0x245   :  { %v377_v11 = vmul.f32 0.0, %v343_v41 }
 0x246   :  { %v354_v47 = vmul.f32 %v1024_v45, %v1024_v45  ;;  %v355_v48 = vmul.f32 %v1026_v46, %v1026_v46  ;;  %v358_v53 = vmul.f32 %v1032_v50, %v1032_v50  ;;  %v359_v55 = vmul.f32 %v1034_v51, %v1034_v51 }
 0x247   :  { %v379_v16 = vmul.f32 %v377_v11, %v343_v41 }
 0x248   :  { %v363_v49 = vadd.f32 %v355_v48, %v354_v47  ;;  %v369_v56 = vadd.f32 %v359_v55, %v358_v53  ;;  %v450_v53 = vstv %s131_s6 }
 0x24a   :  { %367 = vadd.xlane.f32.xlu2 %v366_v44 }
 0x252   :  { %364 = vadd.xlane.f32.xlu2 %v363_v49 }
 0x257   :  { %v426_v41 = vpop.permute.xlu1 %425 }
 0x25a   :  { %370 = vadd.xlane.f32.xlu2 %v369_v56 }
 0x2b5   :  { %v362_v58 = vpop.xlane.xlu2 %361 }
 0x2bd   :  { %v368_v63 = vpop.xlane.xlu2 %367 }
 0x2be   :  { %v372_v0 = vadd.f32 %v368_v63, %v362_v58 }
 0x2c0   :  { %v374_v2 = vmul.f32 0.001953125, %v372_v0 }
 0x2c2   :  { %v380_v4 = vsub.f32 %v374_v2, %v378_v1  ;;  %v496_v1 = vld [vmem:[#allocation14 + $0x28] sm:$0xff] }
 0x2c4   :  { %v382_v5 = vadd.f32 1e-05, %v380_v4 }
 0x2c5   :  { %v365_v6 = vpop.xlane.xlu2 %364 }
 0x2c6   :  { %651 = vrsqrt.f32 %v382_v5  ;;  %vm390_vm4 = vweird.f32 %v382_v5 }
 0x2cc   :  { %v652_v8 = vpop.eup %651 }
 0x2cd   :  { %v385_v12 = vmul.f32 %v652_v8, %v382_v5  ;;  %v371_v13 = vpop.xlane.xlu2 %370  ;;  %vm391_vm3 = vweird.f32 %v652_v8 }
 0x2ce   :  { %v373_v14 = vadd.f32 %v371_v13, %v365_v6  ;;  %vm392_vm5 = vmor %vm390_vm4, %vm391_vm3  ;;  %v499_v6 = vmul.f32 0.5, %v491_v59 }
 0x2cf   :  { %v386_v15 = vmul.f32 %v652_v8, %v385_v12 }
 0x2d0   :  { %v375_v19 = vmul.f32 0.001953125, %v373_v14 }
 0x2d1   :  { %v387_v20 = vmul.f32 0.5, %v386_v15 }
 0x2d2   :  { %v381_v21 = vsub.f32 %v375_v19, %v379_v16  ;;  %v504_v16 = vmul.f32 0.5, %v496_v1 }
 0x2d3   :  { %v388_v22 = vsub.f32 1.5, %v387_v20 }
 0x2d4   :  { %v383_v23 = vadd.f32 1e-05, %v381_v21 }
 0x2d5   :  { %v389_v24 = vmul.f32 %v652_v8, %v388_v22 }
 0x2d6   :  { %653 = vrsqrt.f32 %v383_v23  ;;  %vm400_vm7 = vweird.f32 %v383_v23 }
 0x2d7   :  { %v393_v25 = vsel %vm392_vm5, %v652_v8, %v389_v24  ;;  %v500_v8 = vmul.f32 0.5, %v492_v60 }
 0x2d8   :  { %v404_v26 = vmul.f32 %v393_v25, %v965_v3  ;;  %v441_v3 = vstv %s440_s16 }
 0x2d9   :  { %v442_v37 = vmul.f32 %v441_v3, %v983_v52  ;;  %v443_v48 = vmul.f32 %v441_v3, %v986_v54  ;;  %v447_v49 = vmul.f32 %v441_v3, %v998_v10 }
 0x2da   :  { %408 = vperm.xlu2 %646, %v404_v26  }
 0x2dc   :  { %v654_v27 = vpop.eup %653 }
 0x2dd   :  { %v395_v28 = vmul.f32 %v654_v27, %v383_v23  ;;  %vm401_vm6 = vweird.f32 %v654_v27 }
 0x2de   :  { %vm402_vm8 = vmor %vm400_vm7, %vm401_vm6 }
 0x2df   :  { %v396_v29 = vmul.f32 %v654_v27, %v395_v28 }
 0x2e1   :  { %v397_v30 = vmul.f32 0.5, %v396_v29 }
 0x2e2   :  { %649 = vset.pattern.permute.xlu2 %v887_v57 }
 0x2e3   :  { %v398_v33 = vsub.f32 1.5, %v397_v30  ;;  %429 = vperm.xlu2 %649, %v968_v7   ;;  %v445_v30 = vmul.f32 %v441_v3, %v992_v62 }
 0x2e5   :  { %v399_v34 = vmul.f32 %v654_v27, %v398_v33  ;;  %v448_v33 = vmul.f32 %v441_v3, %v1002_v17 }
 0x2e7   :  { %v403_v35 = vsel %vm402_vm8, %v654_v27, %v399_v34  ;;  %v449_v34 = vmul.f32 %v441_v3, %v1004_v18 }
 0x2e8   :  { %v405_v36 = vmul.f32 %v403_v35, %v968_v7  ;;  %v446_v7 = vmul.f32 %v441_v3, %v996_v9 }
 0x2ea   :  { %413 = vperm.xlu0 %647, %v405_v36  }
 0x2f2   :  { %650 = vset.pattern.permute.xlu0 %v887_v57 }
 0x334   :  { %v409_v38 = vpop.permute.xlu2 %408 }
 0x335   :  { %v416_v42 = vmul.f32 %v409_v38, %v1008_v31  ;;  %v417_v43 = vmul.f32 %v409_v38, %v1010_v32  ;;  %v420_v44 = vmul.f32 %v409_v38, %v1016_v39  ;;  %v421_v47 = vmul.f32 %v409_v38, %v1018_v40  ;;  %v495_v31 = vld [vmem:[#allocation14 + $0x20] sm:$0xff] }
 0x336   :  { %v503_v11 = vmul.f32 0.5, %v495_v31 }
 0x337   :  { %v432_v55 = vadd.f32 %v426_v41, %v416_v42  ;;  %v433_v56 = vadd.f32 %v426_v41, %v417_v43  ;;  %v436_v57 = vadd.f32 %v426_v41, %v420_v44  ;;  %v437_v58 = vadd.f32 %v426_v41, %v421_v47  ;;  %v493_v41 = vld [vmem:[#allocation14 + $0x10] sm:$0xff] }
 0x338   :  { %v497_v42 = vld [vmem:[#allocation14 + $0x30] sm:$0xff] }
 0x339   :  { %v451_v63 = vmul.f32 %v450_v53, %v432_v55  ;;  %v452_v32 = vmul.f32 %v450_v53, %v433_v56  ;;  %v455_v0 = vmul.f32 %v450_v53, %v436_v57  ;;  %v456_v39 = vmul.f32 %v450_v53, %v437_v58 }
 0x33a   :  { %v505_v56 = vmul.f32 0.5, %v497_v42 }
 0x33b   :  { %v459_v40 = vadd.f32 %v451_v63, %v442_v37  ;;  %v460_v2 = vadd.f32 %v452_v32, %v443_v48  ;;  %v463_v4 = vadd.f32 %v455_v0, %v446_v7  ;;  %v464_v5 = vadd.f32 %v456_v39, %v447_v49 }
 0x33d   :  { %467 = vst [vmem:[#allocation17] sm:$0xff] %v459_v40  ;;  %v475_v12 = vmul.f32 1.5, %v459_v40  ;;  %v476_v13 = vmul.f32 1.5, %v460_v2  ;;  %v479_v14 = vmul.f32 1.5, %v463_v4  ;;  %v480_v15 = vmul.f32 1.5, %v464_v5  ;;  %v430_v28 = vpop.permute.xlu2 %429 }
 0x33e   :  { %468 = vst [vmem:[#allocation17 + $0x8] sm:$0xff] %v460_v2 }
 0x33f   :  { %471 = vst [vmem:[#allocation17 + $0x20] sm:$0xff] %v463_v4  ;;  %v483_v19 = vsub.f32 %v983_v52, %v475_v12  ;;  %v484_v20 = vsub.f32 %v986_v54, %v476_v13  ;;  %v487_v21 = vsub.f32 %v996_v9, %v479_v14  ;;  %v488_v22 = vsub.f32 %v998_v10, %v480_v15 }
 0x340   :  { %472 = vst [vmem:[#allocation17 + $0x28] sm:$0xff] %v464_v5  ;;  %v444_v10 = vmul.f32 %v441_v3, %v990_v61  ;;  %v501_v3 = vmul.f32 0.5, %v493_v41 }
 0x341   :  { %v507_v23 = vadd.f32 %v499_v6, %v483_v19  ;;  %v508_v24 = vadd.f32 %v500_v8, %v484_v20  ;;  %v511_v25 = vadd.f32 %v503_v11, %v487_v21  ;;  %v512_v26 = vadd.f32 %v504_v16, %v488_v22 }
 0x343   :  { %515 = vst [vmem:[#allocation16] sm:$0xff] %v507_v23 }
 0x344   :  { %516 = vst [vmem:[#allocation16 + $0x8] sm:$0xff] %v508_v24 }
 0x345   :  { %519 = vst [vmem:[#allocation16 + $0x20] sm:$0xff] %v511_v25 }
 0x346   :  { %520 = vst [vmem:[#allocation16 + $0x28] sm:$0xff] %v512_v26 }
 0x35c   :  { %v414_v27 = vpop.permute.xlu0 %413 }
 0x35d   :  { %v418_v29 = vmul.f32 %v414_v27, %v1024_v45  ;;  %v419_v52 = vmul.f32 %v414_v27, %v1026_v46  ;;  %v422_v54 = vmul.f32 %v414_v27, %v1032_v50  ;;  %v423_v9 = vmul.f32 %v414_v27, %v1034_v51  ;;  %v494_v45 = vld [vmem:[#allocation14 + $0x18] sm:$0xff] }
 0x35e   :  { %v498_v51 = vld [vmem:[#allocation14 + $0x38] sm:$0xff]  ;;  %v502_v55 = vmul.f32 0.5, %v494_v45 }
 0x35f   :  { %v434_v35 = vadd.f32 %v430_v28, %v418_v29  ;;  %v435_v36 = vadd.f32 %v430_v28, %v419_v52  ;;  %v438_v37 = vadd.f32 %v430_v28, %v422_v54  ;;  %v439_v38 = vadd.f32 %v430_v28, %v423_v9 }
 0x360   :  { %v506_v60 = vmul.f32 0.5, %v498_v51 }
 0x361   :  { %v453_v46 = vmul.f32 %v450_v53, %v434_v35  ;;  %v454_v43 = vmul.f32 %v450_v53, %v435_v36  ;;  %v457_v50 = vmul.f32 %v450_v53, %v438_v37  ;;  %v458_v44 = vmul.f32 %v450_v53, %v439_v38 }
 0x363   :  { %v461_v47 = vadd.f32 %v453_v46, %v444_v10  ;;  %v462_v48 = vadd.f32 %v454_v43, %v445_v30  ;;  %v465_v7 = vadd.f32 %v457_v50, %v448_v33  ;;  %v466_v49 = vadd.f32 %v458_v44, %v449_v34 }
 0x365   :  { %469 = vst [vmem:[#allocation17 + $0x10] sm:$0xff] %v461_v47  ;;  %v477_v57 = vmul.f32 1.5, %v461_v47  ;;  %v478_v58 = vmul.f32 1.5, %v462_v48  ;;  %v481_v53 = vmul.f32 1.5, %v465_v7  ;;  %v482_v59 = vmul.f32 1.5, %v466_v49 }
 0x366   :  { %470 = vst [vmem:[#allocation17 + $0x18] sm:$0xff] %v462_v48 }
 0x367   :  { %473 = vst [vmem:[#allocation17 + $0x30] sm:$0xff] %v465_v7  ;;  %v485_v31 = vsub.f32 %v990_v61, %v477_v57  ;;  %v486_v63 = vsub.f32 %v992_v62, %v478_v58  ;;  %v489_v32 = vsub.f32 %v1002_v17, %v481_v53  ;;  %v490_v0 = vsub.f32 %v1004_v18, %v482_v59 }
 0x368   :  { %474 = vst [vmem:[#allocation17 + $0x38] sm:$0xff] %v466_v49 }
 0x369   :  { %v509_v39 = vadd.f32 %v501_v3, %v485_v31  ;;  %v510_v1 = vadd.f32 %v502_v55, %v486_v63  ;;  %v513_v40 = vadd.f32 %v505_v56, %v489_v32  ;;  %548 = dma.vmem_to_hbm [thread:$0]  %s541_s19, 1024, %s543_s22, [#allocation18], %s883_s0, %s883_s0, %s884_s14   ;;  %v514_v61 = vadd.f32 %v506_v60, %v490_v0 }
 0x36b   :  { %517 = vst [vmem:[#allocation16 + $0x10] sm:$0xff] %v509_v39 }
 0x36c   :  { %518 = vst [vmem:[#allocation16 + $0x18] sm:$0xff] %v510_v1 }
 0x36d   :  { %521 = vst [vmem:[#allocation16 + $0x30] sm:$0xff] %v513_v40 }
 0x36e   :  { %522 = vst [vmem:[#allocation16 + $0x38] sm:$0xff] %v514_v61 }
 0x36f   :  { %535 = dma.vmem_to_hbm [thread:$0]  %s528_s2, 1024, %s530_s25, [#allocation7], %s883_s0, %s883_s0, %s884_s14  }
 0x370   :  { %869 = dma.done.wait [#allocation7], 1024  }
 0x371   :  { %870 = vsyncadd [#allocation7], 4294966272 }
 0x372   :  { %871 = dma.done.wait [#allocation18], 1024  }
 0x373   :  { %872 = vsyncadd [#allocation18], 4294966272 }
 0x374   :  { %557 = vsyncpa [#allocation6], 1 }
 0x375   :  { %558 = vsyncpa [#allocation9], 1 }
 0x376   :  { %559 = vsyncpa [#allocation12], 1 }
 0x377   :  { %560 = vsyncpa [#allocation15], 1 }
 0x378   :  { %561 = vsyncpa [#allocation7], 1 }
 0x379   :  { %562 = vsyncpa [#allocation18], 1 }

</bundles_post_ra>
